<compile_context>
chip_gen: v6e
topology: v6e:2x2x1
jax: 0.10.0
libtpu: 0.0.40
codegen_flags: <defaults>
</compile_context>

<pallas_src>
import jax
import jax.numpy as jnp
from jax.experimental import pallas as pl
from jax.experimental.pallas import tpu as pltpu


# ---------------------------------------------------------------------------
# helpers
# ---------------------------------------------------------------------------
def _bf16_dot(a_bf16, b_bf16):
    """MXU matmul: bfloat16 operands, float32 accumulation."""
    return jnp.dot(a_bf16, b_bf16, preferred_element_type=jnp.float32)


# index maps (receive grid index + the two scalar-prefetch refs)
def _rows_map(b, cand_ids, clk_ids):       # per-batch block of a (B*rows, x) array
    return (b, 0)


def _bcast2_map(b, cand_ids, clk_ids):     # full-array weight block, same every step
    return (0, 0)


def _user3_map(b, cand_ids, clk_ids):      # (B, 1, Du) user-embedding block
    return (b, 0, 0)


# ---------------------------------------------------------------------------
# Fused PPRec kernel
# ---------------------------------------------------------------------------
def _pprec_fused_kernel(
    # --- scalar prefetch (SMEM) ---
    cand_ids_ref,   # (B, C) int32
    clk_ids_ref,    # (B, M) int32
    # --- inputs ---
    emb_ref,        # (VOCAB, De) f32, HBM (pl.ANY): gathered via manual DMA
    clk_ctr_ref,    # (M, 1) f32
    cand_ctr_ref,   # (C, 1) f32
    cand_rec_ref,   # (C, 1) f32
    wu_ref,         # (De, Du) bf16  user news-encoder projection
    bu_ref,         # (1, Du)  f32
    wp_ref,         # (De, Dp) bf16  popularity news-encoder projection
    bp_ref,         # (1, Dp)  f32
    wa_ref,         # (Du, Da) bf16  user-encoder attention
    ba_ref,         # (1, Da)  f32
    va_ref,         # (1, Da)  f32   attention query
    wc_ref,         # (1, Dp)  f32   popularity content weight
    wg_ref,         # (1, Du)  f32   aggregator gate weight
    scal_ref,       # (16,)    f32 SMEM  packed scalar parameters
    # --- outputs ---
    score_ref,      # (C, 1)
    pms_ref,        # (C, 1)
    pop_ref,        # (C, 1)
    u_ref,          # (1, 1, Du)
    unews_ref,      # (C, Du)
    pnews_ref,      # (C, Dp)
    # --- scratch ---
    cand_buf,       # (C, De) f32 VMEM
    clk_buf,        # (M, De) f32 VMEM
    cand_sem,       # DMA sems (C,)
    clk_sem,        # DMA sems (M,)
):
    b = pl.program_id(0)
    C, De = cand_buf.shape
    M, _ = clk_buf.shape

    def cand_copy(i):
        row = cand_ids_ref[b, i]
        return pltpu.make_async_copy(emb_ref.at[pl.ds(row, 1), :],
                                     cand_buf.at[pl.ds(i, 1), :],
                                     cand_sem.at[i])

    def clk_copy(i):
        row = clk_ids_ref[b, i]
        return pltpu.make_async_copy(emb_ref.at[pl.ds(row, 1), :],
                                     clk_buf.at[pl.ds(i, 1), :],
                                     clk_sem.at[i])

    # ---- in-kernel embedding gather: HBM rows land directly in VMEM --------
    # Issue every DMA (candidate + clicked) before waiting on anything, so all
    # row fetches are in flight concurrently.
    for i in range(C):
        cand_copy(i).start()
    for i in range(M):
        clk_copy(i).start()

    # Pull all scalar parameters out of SMEM up front (before any DMA wait).
    w_ctr_u, b_ctr_u = scal_ref[0], scal_ref[1]
    b_pc = scal_ref[2]
    w_r, b_r = scal_ref[3], scal_ref[4]
    w_g, b_g = scal_ref[5], scal_ref[6]
    w_ctr_p = scal_ref[7]
    gate_b = scal_ref[8]

    # ---- candidate branch: only needs the candidate rows -------------------
    for i in range(C):
        cand_copy(i).wait()
    cand_bf = cand_buf[...].astype(jnp.bfloat16)                    # (C, De)

    # news encoders: lookup + dense projection (bf16 MXU, f32 acc)
    # TODO(synk): CANE/KANE/LNE internals unavailable; lookup+projection used.
    cand_un = _bf16_dot(cand_bf, wu_ref[...]) + bu_ref[...]         # (C, Du)
    cand_pn = _bf16_dot(cand_bf, wp_ref[...]) + bp_ref[...]         # (C, Dp)
    unews_ref[...] = cand_un
    pnews_ref[...] = cand_pn

    # TimeAwareNewsPopularityPredictor (simplified): recency-gated blend of
    # content popularity, recency score and CTR.  Independent of the user
    # embedding, so it runs while the clicked-row DMAs are still in flight.
    pc = jnp.sum(cand_pn * wc_ref[...], axis=-1, keepdims=True) + b_pc
    rec = cand_rec_ref[...]                                         # (C, 1)
    pr = w_r * rec + b_r
    theta = jax.nn.sigmoid(w_g * rec + b_g)
    pop = theta * pc + (1.0 - theta) * pr + w_ctr_p * cand_ctr_ref[...]
    pop_ref[...] = pop

    # ---- user branch: needs the clicked rows --------------------------------
    for i in range(M):
        clk_copy(i).wait()
    clk_bf = clk_buf[...].astype(jnp.bfloat16)                      # (M, De)
    clk_un = _bf16_dot(clk_bf, wu_ref[...]) + bu_ref[...]           # (M, Du)

    # PopularityAwareUserEncoder (simplified): popularity-aware additive
    # attention pooling over the clicked-news embeddings.
    h = jnp.tanh(_bf16_dot(clk_un.astype(jnp.bfloat16), wa_ref[...])
                 + ba_ref[...])                                     # (M, Da)
    att = jnp.sum(h * va_ref[...], axis=-1, keepdims=True)          # (M, 1)
    logits = att + w_ctr_u * clk_ctr_ref[...] + b_ctr_u             # (M, 1)
    logits = logits - jnp.max(logits, axis=0, keepdims=True)
    e = jnp.exp(logits)
    alpha = e * pl.reciprocal(jnp.sum(e, axis=0, keepdims=True), approx=True)
    u = jnp.sum(alpha * clk_un, axis=0, keepdims=True)              # (1, Du)
    u_ref[...] = u.reshape(1, 1, u.shape[-1])

    # personalized matching score (VPU multiply + lane reduce)
    pms = jnp.sum(cand_un * u, axis=-1, keepdims=True)              # (C, 1)
    pms_ref[...] = pms

    # PersonalizedAggregatorGate + final blend
    eta = jax.nn.sigmoid(
        jnp.sum(u * wg_ref[...], axis=-1, keepdims=True) + gate_b)  # (1, 1)
    score_ref[...] = eta * pms + (1.0 - eta) * pop


# ---------------------------------------------------------------------------
# Wrapper: one fused pallas_call, gridded over the batch dimension
# ---------------------------------------------------------------------------
def pprec_forward(params, cand_ids, cand_ctr, cand_rec, clk_ids, clk_ctr):
    B, C = cand_ids.shape
    _, M = clk_ids.shape
    emb = params["emb_table"]
    _, De = emb.shape
    Du = params["user_proj_w"].shape[1]
    Dp = params["pop_proj_w"].shape[1]
    Da = params["ue_Wa"].shape[1]

    # bf16 MXU operands (f32 accumulation happens in-kernel)
    wu = params["user_proj_w"].astype(jnp.bfloat16)
    wp = params["pop_proj_w"].astype(jnp.bfloat16)
    wa = params["ue_Wa"].astype(jnp.bfloat16)
    bu = params["user_proj_b"].reshape(1, Du)
    bp = params["pop_proj_b"].reshape(1, Dp)
    ba = params["ue_ba"].reshape(1, Da)
    va = params["ue_va"].reshape(1, Da)
    wc = params["pp_wc"].reshape(1, Dp)
    wg = params["gate_w"].reshape(1, Du)

    # per-item scalars as (rows, 1) columns: no in-kernel transposes needed
    clk_ctr_col = clk_ctr.reshape(B * M, 1)
    cand_ctr_col = cand_ctr.reshape(B * C, 1)
    cand_rec_col = cand_rec.reshape(B * C, 1)

    grid_spec = pltpu.PrefetchScalarGridSpec(
        num_scalar_prefetch=2,                                 # cand_ids, clk_ids
        grid=(B,),
        in_specs=[
            pl.BlockSpec(memory_space=pl.ANY),                 # emb_table (HBM)
            pl.BlockSpec((M, 1), _rows_map),                   # clk_ctr
            pl.BlockSpec((C, 1), _rows_map),                   # cand_ctr
            pl.BlockSpec((C, 1), _rows_map),                   # cand_rec
            pl.BlockSpec((De, Du), _bcast2_map),               # wu (bf16)
            pl.BlockSpec((1, Du), _bcast2_map),                # bu
            pl.BlockSpec((De, Dp), _bcast2_map),               # wp (bf16)
            pl.BlockSpec((1, Dp), _bcast2_map),                # bp
            pl.BlockSpec((Du, Da), _bcast2_map),               # wa (bf16)
            pl.BlockSpec((1, Da), _bcast2_map),                # ba
            pl.BlockSpec((1, Da), _bcast2_map),                # va
            pl.BlockSpec((1, Dp), _bcast2_map),                # wc
            pl.BlockSpec((1, Du), _bcast2_map),                # gate_w
            pl.BlockSpec(memory_space=pltpu.MemorySpace.SMEM), # packed scalars
        ],
        out_specs=(
            pl.BlockSpec((C, 1), _rows_map),                   # final score
            pl.BlockSpec((C, 1), _rows_map),                   # personalized matching
            pl.BlockSpec((C, 1), _rows_map),                   # popularity
            pl.BlockSpec((1, 1, Du), _user3_map),              # user embedding
            pl.BlockSpec((C, Du), _rows_map),                  # user news embeddings
            pl.BlockSpec((C, Dp), _rows_map),                  # popularity news emb.
        ),
        scratch_shapes=[
            pltpu.VMEM((C, De), emb.dtype),                    # gathered candidate rows
            pltpu.VMEM((M, De), emb.dtype),                    # gathered clicked rows
            pltpu.SemaphoreType.DMA((C,)),
            pltpu.SemaphoreType.DMA((M,)),
        ],
    )

    flops = 2 * B * ((C + M) * De * Du + C * De * Dp + M * Du * Da)
    transcendentals = B * (M * Da + M + 2 * C + 2)
    bytes_accessed = (
        4 * B * (C + M) * De                          # gathered embedding rows
        + 2 * (De * (Du + Dp) + Du * Da)              # bf16 weights
        + 4 * (Du + Dp + 3 * Da)                      # small f32 params
        + 4 * B * (M + 2 * C)                         # ctr / recency columns
        + 4 * (B * C * (Du + Dp + 3) + B * Du)        # outputs
    )

    outs = pl.pallas_call(
        _pprec_fused_kernel,
        grid_spec=grid_spec,
        out_shape=(
            jax.ShapeDtypeStruct((B * C, 1), jnp.float32),   # final score
            jax.ShapeDtypeStruct((B * C, 1), jnp.float32),   # personalized matching
            jax.ShapeDtypeStruct((B * C, 1), jnp.float32),   # popularity
            jax.ShapeDtypeStruct((B, 1, Du), jnp.float32),   # user embedding
            jax.ShapeDtypeStruct((B * C, Du), jnp.float32),  # user news embeddings
            jax.ShapeDtypeStruct((B * C, Dp), jnp.float32),  # popularity news emb.
        ),
        compiler_params=pltpu.CompilerParams(
            dimension_semantics=("parallel",),               # megacore on v7x
            vmem_limit_bytes=32 * 1024 * 1024,               # fits v7x 64 MiB VMEM
        ),
        cost_estimate=pl.CostEstimate(flops=flops,
                                      transcendentals=transcendentals,
                                      bytes_accessed=bytes_accessed),
    )(
        cand_ids.astype(jnp.int32), clk_ids.astype(jnp.int32),   # scalar prefetch
        emb, clk_ctr_col, cand_ctr_col, cand_rec_col,
        wu, bu, wp, bp, wa, ba, va, wc, wg, params["scalars"],
    )
    score, pms, pop, u3, unews, pnews = outs
    return {
        "score": score.reshape(B, C),
        "personalized_matching_score": pms.reshape(B, C),
        "popularity_score": pop.reshape(B, C),
        "user_news_embeddings": unews.reshape(B, C, Du),
        "popularity_news_embeddings": pnews,                 # (B*C, Dp) like module
        "user_embedding": u3.reshape(B, Du),
    }


# ---------------------------------------------------------------------------
# Pure-JAX reference (same math, same bf16-MXU casts) for a correctness check
# ---------------------------------------------------------------------------
def pprec_reference(params, cand_ids, cand_ctr, cand_rec, clk_ids, clk_ctr):
    B, C = cand_ids.shape
    _, M = clk_ids.shape
    s = params["scalars"]

    def bdot(a, b):
        return jnp.dot(a.astype(jnp.bfloat16), b.astype(jnp.bfloat16),
                       preferred_element_type=jnp.float32)

    cand_raw = params["emb_table"][cand_ids.reshape(-1)]
    clk_raw = params["emb_table"][clk_ids.reshape(-1)]
    cand_un = (bdot(cand_raw, params["user_proj_w"])
               + params["user_proj_b"]).reshape(B, C, -1)
    cand_pn_flat = bdot(cand_raw, params["pop_proj_w"]) + params["pop_proj_b"]
    cand_pn = cand_pn_flat.reshape(B, C, -1)
    clk_un = (bdot(clk_raw, params["user_proj_w"])
              + params["user_proj_b"]).reshape(B, M, -1)

    h = jnp.tanh(bdot(clk_un.reshape(B * M, -1),
                      params["ue_Wa"]).reshape(B, M, -1) + params["ue_ba"])
    a = jnp.sum(h * params["ue_va"], axis=-1) + s[0] * clk_ctr + s[1]
    alpha = jax.nn.softmax(a, axis=1)
    u = jnp.sum(alpha[:, :, None] * clk_un, axis=1)
    pms = jnp.sum(u[:, None, :] * cand_un, axis=-1)

    pc = jnp.sum(cand_pn * params["pp_wc"], axis=-1) + s[2]
    pr = s[3] * cand_rec + s[4]
    theta = jax.nn.sigmoid(s[5] * cand_rec + s[6])
    pop = theta * pc + (1.0 - theta) * pr + s[7] * cand_ctr

    eta = jax.nn.sigmoid(jnp.sum(u * params["gate_w"], axis=-1, keepdims=True)
                         + s[8])
    score = eta * pms + (1.0 - eta) * pop
    return {
        "score": score,
        "personalized_matching_score": pms,
        "popularity_score": pop,
        "user_news_embeddings": cand_un,
        "popularity_news_embeddings": cand_pn_flat,
        "user_embedding": u,
    }


# ---------------------------------------------------------------------------
if __name__ == "__main__":
    B, C, M = 4, 8, 8                       # batch, candidate_size, max_clicked
    VOCAB = 64
    De, Du, Dp, Da = 128, 128, 128, 128     # 128-lane aligned feature dims

    key = jax.random.PRNGKey(0)
    ks = jax.random.split(key, 16)

    params = {
        "emb_table":   jax.random.normal(ks[0], (VOCAB, De), jnp.float32) * 0.1,
        "user_proj_w": jax.random.normal(ks[1], (De, Du), jnp.float32) * 0.1,
        "user_proj_b": jax.random.normal(ks[2], (Du,), jnp.float32) * 0.01,
        "pop_proj_w":  jax.random.normal(ks[3], (De, Dp), jnp.float32) * 0.1,
        "pop_proj_b":  jax.random.normal(ks[4], (Dp,), jnp.float32) * 0.01,
        "ue_Wa":       jax.random.normal(ks[5], (Du, Da), jnp.float32) * 0.1,
        "ue_ba":       jax.random.normal(ks[6], (Da,), jnp.float32) * 0.01,
        "ue_va":       jax.random.normal(ks[7], (Da,), jnp.float32) * 0.1,
        "pp_wc":       jax.random.normal(ks[8], (Dp,), jnp.float32) * 0.1,
        "gate_w":      jax.random.normal(ks[9], (Du,), jnp.float32) * 0.1,
        # [ue_w_ctr, ue_b_ctr, pp_b_c, pp_w_r, pp_b_r, pp_w_g, pp_b_g,
        #  pp_w_ctr, gate_b, pad...]
        "scalars": jnp.array(
            [0.5, 0.0, 0.1, -0.01, 0.2, -0.05, 1.0, 0.3, 0.0,
             0.0, 0.0, 0.0, 0.0, 0.0, 0.0, 0.0], jnp.float32),
    }

    cand_ids = jax.random.randint(ks[10], (B, C), 0, VOCAB)
    clk_ids = jax.random.randint(ks[11], (B, M), 0, VOCAB)
    cand_ctr = jax.random.uniform(ks[12], (B, C), jnp.float32)
    clk_ctr = jax.random.uniform(ks[13], (B, M), jnp.float32)
    cand_rec = jax.random.uniform(ks[14], (B, C), jnp.float32) * 48.0  # hours

    out = pprec_forward(params, cand_ids, cand_ctr, cand_rec, clk_ids, clk_ctr)
    jax.block_until_ready(out)

    ref = pprec_reference(params, cand_ids, cand_ctr, cand_rec, clk_ids, clk_ctr)
    tol = dict(atol=5e-3, rtol=5e-3)
    assert jnp.allclose(out["score"], ref["score"], **tol), "score mismatch"
    assert jnp.allclose(out["personalized_matching_score"],
                        ref["personalized_matching_score"], **tol)
    assert jnp.allclose(out["popularity_score"], ref["popularity_score"], **tol)
    assert jnp.allclose(out["user_embedding"], ref["user_embedding"], **tol)
    assert jnp.allclose(out["user_news_embeddings"],
                        ref["user_news_embeddings"], **tol)
    assert jnp.allclose(out["popularity_news_embeddings"],
                        ref["popularity_news_embeddings"], **tol)

    print("KERNEL_OK")
</pallas_src>

<mosaic_0001>
module attributes {stable_mosaic.version = 11 : i64} {
  func.func @_pprec_fused_kernel(%arg0: i32, %arg1: memref<4x8xi32, #tpu.memory_space<smem>>, %arg2: memref<4x8xi32, #tpu.memory_space<smem>>, %arg3: memref<64x128xf32, #tpu.memory_space<any>>, %arg4: memref<8x1xf32, #tpu.memory_space<vmem>>, %arg5: memref<8x1xf32, #tpu.memory_space<vmem>>, %arg6: memref<8x1xf32, #tpu.memory_space<vmem>>, %arg7: memref<128x128xbf16, #tpu.memory_space<vmem>>, %arg8: memref<1x128xf32, #tpu.memory_space<vmem>>, %arg9: memref<128x128xbf16, #tpu.memory_space<vmem>>, %arg10: memref<1x128xf32, #tpu.memory_space<vmem>>, %arg11: memref<128x128xbf16, #tpu.memory_space<vmem>>, %arg12: memref<1x128xf32, #tpu.memory_space<vmem>>, %arg13: memref<1x128xf32, #tpu.memory_space<vmem>>, %arg14: memref<1x128xf32, #tpu.memory_space<vmem>>, %arg15: memref<1x128xf32, #tpu.memory_space<vmem>>, %arg16: memref<16xf32, #tpu.memory_space<smem>>, %arg17: memref<8x1xf32, #tpu.memory_space<vmem>>, %arg18: memref<8x1xf32, #tpu.memory_space<vmem>>, %arg19: memref<8x1xf32, #tpu.memory_space<vmem>>, %arg20: memref<1x1x128xf32, #tpu.memory_space<vmem>>, %arg21: memref<8x128xf32, #tpu.memory_space<vmem>>, %arg22: memref<8x128xf32, #tpu.memory_space<vmem>>, %arg23: memref<8x128xf32, #tpu.memory_space<vmem>>, %arg24: memref<8x128xf32, #tpu.memory_space<vmem>>, %arg25: memref<8x!tpu.dma_semaphore, #tpu.memory_space<semaphore_mem>>, %arg26: memref<8x!tpu.dma_semaphore, #tpu.memory_space<semaphore_mem>>) attributes {dimension_semantics = [#tpu.dimension_semantics<parallel>], iteration_bounds = array<i64: 4>, scalar_prefetch = 2 : i64, scratch_operands = 4 : i64, tpu.core_type = #tpu.core_type<tc>, window_params = [{}, {transform_indices = @transform_1, window_bounds = array<i64: 8, 1>}, {transform_indices = @transform_2, window_bounds = array<i64: 8, 1>}, {transform_indices = @transform_3, window_bounds = array<i64: 8, 1>}, {pipeline_mode = #tpu.pipeline_mode<synchronous>, transform_indices = @transform_4, window_bounds = array<i64: 128, 128>}, {pipeline_mode = #tpu.pipeline_mode<synchronous>, transform_indices = @transform_5, window_bounds = array<i64: 1, 128>}, {pipeline_mode = #tpu.pipeline_mode<synchronous>, transform_indices = @transform_6, window_bounds = array<i64: 128, 128>}, {pipeline_mode = #tpu.pipeline_mode<synchronous>, transform_indices = @transform_7, window_bounds = array<i64: 1, 128>}, {pipeline_mode = #tpu.pipeline_mode<synchronous>, transform_indices = @transform_8, window_bounds = array<i64: 128, 128>}, {pipeline_mode = #tpu.pipeline_mode<synchronous>, transform_indices = @transform_9, window_bounds = array<i64: 1, 128>}, {pipeline_mode = #tpu.pipeline_mode<synchronous>, transform_indices = @transform_10, window_bounds = array<i64: 1, 128>}, {pipeline_mode = #tpu.pipeline_mode<synchronous>, transform_indices = @transform_11, window_bounds = array<i64: 1, 128>}, {pipeline_mode = #tpu.pipeline_mode<synchronous>, transform_indices = @transform_12, window_bounds = array<i64: 1, 128>}, {transform_indices = @transform_13, window_bounds = array<i64: 16>}, {transform_indices = @transform_14, window_bounds = array<i64: 8, 1>}, {transform_indices = @transform_15, window_bounds = array<i64: 8, 1>}, {transform_indices = @transform_16, window_bounds = array<i64: 8, 1>}, {transform_indices = @transform_17, window_bounds = array<i64: 1, 1, 128>}, {transform_indices = @transform_18, window_bounds = array<i64: 8, 128>}, {transform_indices = @transform_19, window_bounds = array<i64: 8, 128>}]} {
    %0 = arith.index_cast %arg0 : i32 to index
    %c0 = arith.constant 0 : index
    %1 = memref.load %arg1[%0, %c0] : memref<4x8xi32, #tpu.memory_space<smem>>
    %c0_i32 = arith.constant 0 : i32
    %c0_i32_0 = arith.constant 0 : i32
    %2 = tpu.memref_slice %arg3[%1, %c0_i32_0] : memref<64x128xf32, #tpu.memory_space<any>> -> memref<1x128xf32, #tpu.memory_space<any>>
    %c0_i32_1 = arith.constant 0 : i32
    %c0_i32_2 = arith.constant 0 : i32
    %3 = tpu.memref_slice %arg23[%c0_i32_1, %c0_i32_2] : memref<8x128xf32, #tpu.memory_space<vmem>> -> memref<1x128xf32, #tpu.memory_space<vmem>>
    %4 = tpu.memref_slice %arg25[%c0_i32] : memref<8x!tpu.dma_semaphore, #tpu.memory_space<semaphore_mem>> -> memref<1x!tpu.dma_semaphore, #tpu.memory_space<semaphore_mem>>
    %5 = tpu.memref_squeeze %4 : memref<1x!tpu.dma_semaphore, #tpu.memory_space<semaphore_mem>> -> memref<!tpu.dma_semaphore, #tpu.memory_space<semaphore_mem>>
    tpu.enqueue_dma source(%2 : memref<1x128xf32, #tpu.memory_space<any>>) target(%3 : memref<1x128xf32, #tpu.memory_space<vmem>>) target_semaphore(%5 : memref<!tpu.dma_semaphore, #tpu.memory_space<semaphore_mem>>)
    %6 = arith.index_cast %arg0 : i32 to index
    %c1 = arith.constant 1 : index
    %7 = memref.load %arg1[%6, %c1] : memref<4x8xi32, #tpu.memory_space<smem>>
    %c1_i32 = arith.constant 1 : i32
    %c0_i32_3 = arith.constant 0 : i32
    %8 = tpu.memref_slice %arg3[%7, %c0_i32_3] : memref<64x128xf32, #tpu.memory_space<any>> -> memref<1x128xf32, #tpu.memory_space<any>>
    %c1_i32_4 = arith.constant 1 : i32
    %c0_i32_5 = arith.constant 0 : i32
    %9 = tpu.memref_slice %arg23[%c1_i32_4, %c0_i32_5] : memref<8x128xf32, #tpu.memory_space<vmem>> -> memref<1x128xf32, #tpu.memory_space<vmem>>
    %10 = tpu.memref_slice %arg25[%c1_i32] : memref<8x!tpu.dma_semaphore, #tpu.memory_space<semaphore_mem>> -> memref<1x!tpu.dma_semaphore, #tpu.memory_space<semaphore_mem>>
    %11 = tpu.memref_squeeze %10 : memref<1x!tpu.dma_semaphore, #tpu.memory_space<semaphore_mem>> -> memref<!tpu.dma_semaphore, #tpu.memory_space<semaphore_mem>>
    tpu.enqueue_dma source(%8 : memref<1x128xf32, #tpu.memory_space<any>>) target(%9 : memref<1x128xf32, #tpu.memory_space<vmem>>) target_semaphore(%11 : memref<!tpu.dma_semaphore, #tpu.memory_space<semaphore_mem>>)
    %12 = arith.index_cast %arg0 : i32 to index
    %c2 = arith.constant 2 : index
    %13 = memref.load %arg1[%12, %c2] : memref<4x8xi32, #tpu.memory_space<smem>>
    %c2_i32 = arith.constant 2 : i32
    %c0_i32_6 = arith.constant 0 : i32
    %14 = tpu.memref_slice %arg3[%13, %c0_i32_6] : memref<64x128xf32, #tpu.memory_space<any>> -> memref<1x128xf32, #tpu.memory_space<any>>
    %c2_i32_7 = arith.constant 2 : i32
    %c0_i32_8 = arith.constant 0 : i32
    %15 = tpu.memref_slice %arg23[%c2_i32_7, %c0_i32_8] : memref<8x128xf32, #tpu.memory_space<vmem>> -> memref<1x128xf32, #tpu.memory_space<vmem>>
    %16 = tpu.memref_slice %arg25[%c2_i32] : memref<8x!tpu.dma_semaphore, #tpu.memory_space<semaphore_mem>> -> memref<1x!tpu.dma_semaphore, #tpu.memory_space<semaphore_mem>>
    %17 = tpu.memref_squeeze %16 : memref<1x!tpu.dma_semaphore, #tpu.memory_space<semaphore_mem>> -> memref<!tpu.dma_semaphore, #tpu.memory_space<semaphore_mem>>
    tpu.enqueue_dma source(%14 : memref<1x128xf32, #tpu.memory_space<any>>) target(%15 : memref<1x128xf32, #tpu.memory_space<vmem>>) target_semaphore(%17 : memref<!tpu.dma_semaphore, #tpu.memory_space<semaphore_mem>>)
    %18 = arith.index_cast %arg0 : i32 to index
    %c3 = arith.constant 3 : index
    %19 = memref.load %arg1[%18, %c3] : memref<4x8xi32, #tpu.memory_space<smem>>
    %c3_i32 = arith.constant 3 : i32
    %c0_i32_9 = arith.constant 0 : i32
    %20 = tpu.memref_slice %arg3[%19, %c0_i32_9] : memref<64x128xf32, #tpu.memory_space<any>> -> memref<1x128xf32, #tpu.memory_space<any>>
    %c3_i32_10 = arith.constant 3 : i32
    %c0_i32_11 = arith.constant 0 : i32
    %21 = tpu.memref_slice %arg23[%c3_i32_10, %c0_i32_11] : memref<8x128xf32, #tpu.memory_space<vmem>> -> memref<1x128xf32, #tpu.memory_space<vmem>>
    %22 = tpu.memref_slice %arg25[%c3_i32] : memref<8x!tpu.dma_semaphore, #tpu.memory_space<semaphore_mem>> -> memref<1x!tpu.dma_semaphore, #tpu.memory_space<semaphore_mem>>
    %23 = tpu.memref_squeeze %22 : memref<1x!tpu.dma_semaphore, #tpu.memory_space<semaphore_mem>> -> memref<!tpu.dma_semaphore, #tpu.memory_space<semaphore_mem>>
    tpu.enqueue_dma source(%20 : memref<1x128xf32, #tpu.memory_space<any>>) target(%21 : memref<1x128xf32, #tpu.memory_space<vmem>>) target_semaphore(%23 : memref<!tpu.dma_semaphore, #tpu.memory_space<semaphore_mem>>)
    %24 = arith.index_cast %arg0 : i32 to index
    %c4 = arith.constant 4 : index
    %25 = memref.load %arg1[%24, %c4] : memref<4x8xi32, #tpu.memory_space<smem>>
    %c4_i32 = arith.constant 4 : i32
    %c0_i32_12 = arith.constant 0 : i32
    %26 = tpu.memref_slice %arg3[%25, %c0_i32_12] : memref<64x128xf32, #tpu.memory_space<any>> -> memref<1x128xf32, #tpu.memory_space<any>>
    %c4_i32_13 = arith.constant 4 : i32
    %c0_i32_14 = arith.constant 0 : i32
    %27 = tpu.memref_slice %arg23[%c4_i32_13, %c0_i32_14] : memref<8x128xf32, #tpu.memory_space<vmem>> -> memref<1x128xf32, #tpu.memory_space<vmem>>
    %28 = tpu.memref_slice %arg25[%c4_i32] : memref<8x!tpu.dma_semaphore, #tpu.memory_space<semaphore_mem>> -> memref<1x!tpu.dma_semaphore, #tpu.memory_space<semaphore_mem>>
    %29 = tpu.memref_squeeze %28 : memref<1x!tpu.dma_semaphore, #tpu.memory_space<semaphore_mem>> -> memref<!tpu.dma_semaphore, #tpu.memory_space<semaphore_mem>>
    tpu.enqueue_dma source(%26 : memref<1x128xf32, #tpu.memory_space<any>>) target(%27 : memref<1x128xf32, #tpu.memory_space<vmem>>) target_semaphore(%29 : memref<!tpu.dma_semaphore, #tpu.memory_space<semaphore_mem>>)
    %30 = arith.index_cast %arg0 : i32 to index
    %c5 = arith.constant 5 : index
    %31 = memref.load %arg1[%30, %c5] : memref<4x8xi32, #tpu.memory_space<smem>>
    %c5_i32 = arith.constant 5 : i32
    %c0_i32_15 = arith.constant 0 : i32
    %32 = tpu.memref_slice %arg3[%31, %c0_i32_15] : memref<64x128xf32, #tpu.memory_space<any>> -> memref<1x128xf32, #tpu.memory_space<any>>
    %c5_i32_16 = arith.constant 5 : i32
    %c0_i32_17 = arith.constant 0 : i32
    %33 = tpu.memref_slice %arg23[%c5_i32_16, %c0_i32_17] : memref<8x128xf32, #tpu.memory_space<vmem>> -> memref<1x128xf32, #tpu.memory_space<vmem>>
    %34 = tpu.memref_slice %arg25[%c5_i32] : memref<8x!tpu.dma_semaphore, #tpu.memory_space<semaphore_mem>> -> memref<1x!tpu.dma_semaphore, #tpu.memory_space<semaphore_mem>>
    %35 = tpu.memref_squeeze %34 : memref<1x!tpu.dma_semaphore, #tpu.memory_space<semaphore_mem>> -> memref<!tpu.dma_semaphore, #tpu.memory_space<semaphore_mem>>
    tpu.enqueue_dma source(%32 : memref<1x128xf32, #tpu.memory_space<any>>) target(%33 : memref<1x128xf32, #tpu.memory_space<vmem>>) target_semaphore(%35 : memref<!tpu.dma_semaphore, #tpu.memory_space<semaphore_mem>>)
    %36 = arith.index_cast %arg0 : i32 to index
    %c6 = arith.constant 6 : index
    %37 = memref.load %arg1[%36, %c6] : memref<4x8xi32, #tpu.memory_space<smem>>
    %c6_i32 = arith.constant 6 : i32
    %c0_i32_18 = arith.constant 0 : i32
    %38 = tpu.memref_slice %arg3[%37, %c0_i32_18] : memref<64x128xf32, #tpu.memory_space<any>> -> memref<1x128xf32, #tpu.memory_space<any>>
    %c6_i32_19 = arith.constant 6 : i32
    %c0_i32_20 = arith.constant 0 : i32
    %39 = tpu.memref_slice %arg23[%c6_i32_19, %c0_i32_20] : memref<8x128xf32, #tpu.memory_space<vmem>> -> memref<1x128xf32, #tpu.memory_space<vmem>>
    %40 = tpu.memref_slice %arg25[%c6_i32] : memref<8x!tpu.dma_semaphore, #tpu.memory_space<semaphore_mem>> -> memref<1x!tpu.dma_semaphore, #tpu.memory_space<semaphore_mem>>
    %41 = tpu.memref_squeeze %40 : memref<1x!tpu.dma_semaphore, #tpu.memory_space<semaphore_mem>> -> memref<!tpu.dma_semaphore, #tpu.memory_space<semaphore_mem>>
    tpu.enqueue_dma source(%38 : memref<1x128xf32, #tpu.memory_space<any>>) target(%39 : memref<1x128xf32, #tpu.memory_space<vmem>>) target_semaphore(%41 : memref<!tpu.dma_semaphore, #tpu.memory_space<semaphore_mem>>)
    %42 = arith.index_cast %arg0 : i32 to index
    %c7 = arith.constant 7 : index
    %43 = memref.load %arg1[%42, %c7] : memref<4x8xi32, #tpu.memory_space<smem>>
    %c7_i32 = arith.constant 7 : i32
    %c0_i32_21 = arith.constant 0 : i32
    %44 = tpu.memref_slice %arg3[%43, %c0_i32_21] : memref<64x128xf32, #tpu.memory_space<any>> -> memref<1x128xf32, #tpu.memory_space<any>>
    %c7_i32_22 = arith.constant 7 : i32
    %c0_i32_23 = arith.constant 0 : i32
    %45 = tpu.memref_slice %arg23[%c7_i32_22, %c0_i32_23] : memref<8x128xf32, #tpu.memory_space<vmem>> -> memref<1x128xf32, #tpu.memory_space<vmem>>
    %46 = tpu.memref_slice %arg25[%c7_i32] : memref<8x!tpu.dma_semaphore, #tpu.memory_space<semaphore_mem>> -> memref<1x!tpu.dma_semaphore, #tpu.memory_space<semaphore_mem>>
    %47 = tpu.memref_squeeze %46 : memref<1x!tpu.dma_semaphore, #tpu.memory_space<semaphore_mem>> -> memref<!tpu.dma_semaphore, #tpu.memory_space<semaphore_mem>>
    tpu.enqueue_dma source(%44 : memref<1x128xf32, #tpu.memory_space<any>>) target(%45 : memref<1x128xf32, #tpu.memory_space<vmem>>) target_semaphore(%47 : memref<!tpu.dma_semaphore, #tpu.memory_space<semaphore_mem>>)
    %48 = arith.index_cast %arg0 : i32 to index
    %c0_24 = arith.constant 0 : index
    %49 = memref.load %arg2[%48, %c0_24] : memref<4x8xi32, #tpu.memory_space<smem>>
    %c0_i32_25 = arith.constant 0 : i32
    %c0_i32_26 = arith.constant 0 : i32
    %50 = tpu.memref_slice %arg3[%49, %c0_i32_26] : memref<64x128xf32, #tpu.memory_space<any>> -> memref<1x128xf32, #tpu.memory_space<any>>
    %c0_i32_27 = arith.constant 0 : i32
    %c0_i32_28 = arith.constant 0 : i32
    %51 = tpu.memref_slice %arg24[%c0_i32_27, %c0_i32_28] : memref<8x128xf32, #tpu.memory_space<vmem>> -> memref<1x128xf32, #tpu.memory_space<vmem>>
    %52 = tpu.memref_slice %arg26[%c0_i32_25] : memref<8x!tpu.dma_semaphore, #tpu.memory_space<semaphore_mem>> -> memref<1x!tpu.dma_semaphore, #tpu.memory_space<semaphore_mem>>
    %53 = tpu.memref_squeeze %52 : memref<1x!tpu.dma_semaphore, #tpu.memory_space<semaphore_mem>> -> memref<!tpu.dma_semaphore, #tpu.memory_space<semaphore_mem>>
    tpu.enqueue_dma source(%50 : memref<1x128xf32, #tpu.memory_space<any>>) target(%51 : memref<1x128xf32, #tpu.memory_space<vmem>>) target_semaphore(%53 : memref<!tpu.dma_semaphore, #tpu.memory_space<semaphore_mem>>)
    %54 = arith.index_cast %arg0 : i32 to index
    %c1_29 = arith.constant 1 : index
    %55 = memref.load %arg2[%54, %c1_29] : memref<4x8xi32, #tpu.memory_space<smem>>
    %c1_i32_30 = arith.constant 1 : i32
    %c0_i32_31 = arith.constant 0 : i32
    %56 = tpu.memref_slice %arg3[%55, %c0_i32_31] : memref<64x128xf32, #tpu.memory_space<any>> -> memref<1x128xf32, #tpu.memory_space<any>>
    %c1_i32_32 = arith.constant 1 : i32
    %c0_i32_33 = arith.constant 0 : i32
    %57 = tpu.memref_slice %arg24[%c1_i32_32, %c0_i32_33] : memref<8x128xf32, #tpu.memory_space<vmem>> -> memref<1x128xf32, #tpu.memory_space<vmem>>
    %58 = tpu.memref_slice %arg26[%c1_i32_30] : memref<8x!tpu.dma_semaphore, #tpu.memory_space<semaphore_mem>> -> memref<1x!tpu.dma_semaphore, #tpu.memory_space<semaphore_mem>>
    %59 = tpu.memref_squeeze %58 : memref<1x!tpu.dma_semaphore, #tpu.memory_space<semaphore_mem>> -> memref<!tpu.dma_semaphore, #tpu.memory_space<semaphore_mem>>
    tpu.enqueue_dma source(%56 : memref<1x128xf32, #tpu.memory_space<any>>) target(%57 : memref<1x128xf32, #tpu.memory_space<vmem>>) target_semaphore(%59 : memref<!tpu.dma_semaphore, #tpu.memory_space<semaphore_mem>>)
    %60 = arith.index_cast %arg0 : i32 to index
    %c2_34 = arith.constant 2 : index
    %61 = memref.load %arg2[%60, %c2_34] : memref<4x8xi32, #tpu.memory_space<smem>>
    %c2_i32_35 = arith.constant 2 : i32
    %c0_i32_36 = arith.constant 0 : i32
    %62 = tpu.memref_slice %arg3[%61, %c0_i32_36] : memref<64x128xf32, #tpu.memory_space<any>> -> memref<1x128xf32, #tpu.memory_space<any>>
    %c2_i32_37 = arith.constant 2 : i32
    %c0_i32_38 = arith.constant 0 : i32
    %63 = tpu.memref_slice %arg24[%c2_i32_37, %c0_i32_38] : memref<8x128xf32, #tpu.memory_space<vmem>> -> memref<1x128xf32, #tpu.memory_space<vmem>>
    %64 = tpu.memref_slice %arg26[%c2_i32_35] : memref<8x!tpu.dma_semaphore, #tpu.memory_space<semaphore_mem>> -> memref<1x!tpu.dma_semaphore, #tpu.memory_space<semaphore_mem>>
    %65 = tpu.memref_squeeze %64 : memref<1x!tpu.dma_semaphore, #tpu.memory_space<semaphore_mem>> -> memref<!tpu.dma_semaphore, #tpu.memory_space<semaphore_mem>>
    tpu.enqueue_dma source(%62 : memref<1x128xf32, #tpu.memory_space<any>>) target(%63 : memref<1x128xf32, #tpu.memory_space<vmem>>) target_semaphore(%65 : memref<!tpu.dma_semaphore, #tpu.memory_space<semaphore_mem>>)
    %66 = arith.index_cast %arg0 : i32 to index
    %c3_39 = arith.constant 3 : index
    %67 = memref.load %arg2[%66, %c3_39] : memref<4x8xi32, #tpu.memory_space<smem>>
    %c3_i32_40 = arith.constant 3 : i32
    %c0_i32_41 = arith.constant 0 : i32
    %68 = tpu.memref_slice %arg3[%67, %c0_i32_41] : memref<64x128xf32, #tpu.memory_space<any>> -> memref<1x128xf32, #tpu.memory_space<any>>
    %c3_i32_42 = arith.constant 3 : i32
    %c0_i32_43 = arith.constant 0 : i32
    %69 = tpu.memref_slice %arg24[%c3_i32_42, %c0_i32_43] : memref<8x128xf32, #tpu.memory_space<vmem>> -> memref<1x128xf32, #tpu.memory_space<vmem>>
    %70 = tpu.memref_slice %arg26[%c3_i32_40] : memref<8x!tpu.dma_semaphore, #tpu.memory_space<semaphore_mem>> -> memref<1x!tpu.dma_semaphore, #tpu.memory_space<semaphore_mem>>
    %71 = tpu.memref_squeeze %70 : memref<1x!tpu.dma_semaphore, #tpu.memory_space<semaphore_mem>> -> memref<!tpu.dma_semaphore, #tpu.memory_space<semaphore_mem>>
    tpu.enqueue_dma source(%68 : memref<1x128xf32, #tpu.memory_space<any>>) target(%69 : memref<1x128xf32, #tpu.memory_space<vmem>>) target_semaphore(%71 : memref<!tpu.dma_semaphore, #tpu.memory_space<semaphore_mem>>)
    %72 = arith.index_cast %arg0 : i32 to index
    %c4_44 = arith.constant 4 : index
    %73 = memref.load %arg2[%72, %c4_44] : memref<4x8xi32, #tpu.memory_space<smem>>
    %c4_i32_45 = arith.constant 4 : i32
    %c0_i32_46 = arith.constant 0 : i32
    %74 = tpu.memref_slice %arg3[%73, %c0_i32_46] : memref<64x128xf32, #tpu.memory_space<any>> -> memref<1x128xf32, #tpu.memory_space<any>>
    %c4_i32_47 = arith.constant 4 : i32
    %c0_i32_48 = arith.constant 0 : i32
    %75 = tpu.memref_slice %arg24[%c4_i32_47, %c0_i32_48] : memref<8x128xf32, #tpu.memory_space<vmem>> -> memref<1x128xf32, #tpu.memory_space<vmem>>
    %76 = tpu.memref_slice %arg26[%c4_i32_45] : memref<8x!tpu.dma_semaphore, #tpu.memory_space<semaphore_mem>> -> memref<1x!tpu.dma_semaphore, #tpu.memory_space<semaphore_mem>>
    %77 = tpu.memref_squeeze %76 : memref<1x!tpu.dma_semaphore, #tpu.memory_space<semaphore_mem>> -> memref<!tpu.dma_semaphore, #tpu.memory_space<semaphore_mem>>
    tpu.enqueue_dma source(%74 : memref<1x128xf32, #tpu.memory_space<any>>) target(%75 : memref<1x128xf32, #tpu.memory_space<vmem>>) target_semaphore(%77 : memref<!tpu.dma_semaphore, #tpu.memory_space<semaphore_mem>>)
    %78 = arith.index_cast %arg0 : i32 to index
    %c5_49 = arith.constant 5 : index
    %79 = memref.load %arg2[%78, %c5_49] : memref<4x8xi32, #tpu.memory_space<smem>>
    %c5_i32_50 = arith.constant 5 : i32
    %c0_i32_51 = arith.constant 0 : i32
    %80 = tpu.memref_slice %arg3[%79, %c0_i32_51] : memref<64x128xf32, #tpu.memory_space<any>> -> memref<1x128xf32, #tpu.memory_space<any>>
    %c5_i32_52 = arith.constant 5 : i32
    %c0_i32_53 = arith.constant 0 : i32
    %81 = tpu.memref_slice %arg24[%c5_i32_52, %c0_i32_53] : memref<8x128xf32, #tpu.memory_space<vmem>> -> memref<1x128xf32, #tpu.memory_space<vmem>>
    %82 = tpu.memref_slice %arg26[%c5_i32_50] : memref<8x!tpu.dma_semaphore, #tpu.memory_space<semaphore_mem>> -> memref<1x!tpu.dma_semaphore, #tpu.memory_space<semaphore_mem>>
    %83 = tpu.memref_squeeze %82 : memref<1x!tpu.dma_semaphore, #tpu.memory_space<semaphore_mem>> -> memref<!tpu.dma_semaphore, #tpu.memory_space<semaphore_mem>>
    tpu.enqueue_dma source(%80 : memref<1x128xf32, #tpu.memory_space<any>>) target(%81 : memref<1x128xf32, #tpu.memory_space<vmem>>) target_semaphore(%83 : memref<!tpu.dma_semaphore, #tpu.memory_space<semaphore_mem>>)
    %84 = arith.index_cast %arg0 : i32 to index
    %c6_54 = arith.constant 6 : index
    %85 = memref.load %arg2[%84, %c6_54] : memref<4x8xi32, #tpu.memory_space<smem>>
    %c6_i32_55 = arith.constant 6 : i32
    %c0_i32_56 = arith.constant 0 : i32
    %86 = tpu.memref_slice %arg3[%85, %c0_i32_56] : memref<64x128xf32, #tpu.memory_space<any>> -> memref<1x128xf32, #tpu.memory_space<any>>
    %c6_i32_57 = arith.constant 6 : i32
    %c0_i32_58 = arith.constant 0 : i32
    %87 = tpu.memref_slice %arg24[%c6_i32_57, %c0_i32_58] : memref<8x128xf32, #tpu.memory_space<vmem>> -> memref<1x128xf32, #tpu.memory_space<vmem>>
    %88 = tpu.memref_slice %arg26[%c6_i32_55] : memref<8x!tpu.dma_semaphore, #tpu.memory_space<semaphore_mem>> -> memref<1x!tpu.dma_semaphore, #tpu.memory_space<semaphore_mem>>
    %89 = tpu.memref_squeeze %88 : memref<1x!tpu.dma_semaphore, #tpu.memory_space<semaphore_mem>> -> memref<!tpu.dma_semaphore, #tpu.memory_space<semaphore_mem>>
    tpu.enqueue_dma source(%86 : memref<1x128xf32, #tpu.memory_space<any>>) target(%87 : memref<1x128xf32, #tpu.memory_space<vmem>>) target_semaphore(%89 : memref<!tpu.dma_semaphore, #tpu.memory_space<semaphore_mem>>)
    %90 = arith.index_cast %arg0 : i32 to index
    %c7_59 = arith.constant 7 : index
    %91 = memref.load %arg2[%90, %c7_59] : memref<4x8xi32, #tpu.memory_space<smem>>
    %c7_i32_60 = arith.constant 7 : i32
    %c0_i32_61 = arith.constant 0 : i32
    %92 = tpu.memref_slice %arg3[%91, %c0_i32_61] : memref<64x128xf32, #tpu.memory_space<any>> -> memref<1x128xf32, #tpu.memory_space<any>>
    %c7_i32_62 = arith.constant 7 : i32
    %c0_i32_63 = arith.constant 0 : i32
    %93 = tpu.memref_slice %arg24[%c7_i32_62, %c0_i32_63] : memref<8x128xf32, #tpu.memory_space<vmem>> -> memref<1x128xf32, #tpu.memory_space<vmem>>
    %94 = tpu.memref_slice %arg26[%c7_i32_60] : memref<8x!tpu.dma_semaphore, #tpu.memory_space<semaphore_mem>> -> memref<1x!tpu.dma_semaphore, #tpu.memory_space<semaphore_mem>>
    %95 = tpu.memref_squeeze %94 : memref<1x!tpu.dma_semaphore, #tpu.memory_space<semaphore_mem>> -> memref<!tpu.dma_semaphore, #tpu.memory_space<semaphore_mem>>
    tpu.enqueue_dma source(%92 : memref<1x128xf32, #tpu.memory_space<any>>) target(%93 : memref<1x128xf32, #tpu.memory_space<vmem>>) target_semaphore(%95 : memref<!tpu.dma_semaphore, #tpu.memory_space<semaphore_mem>>)
    %c0_64 = arith.constant 0 : index
    %96 = memref.load %arg16[%c0_64] : memref<16xf32, #tpu.memory_space<smem>>
    %c1_65 = arith.constant 1 : index
    %97 = memref.load %arg16[%c1_65] : memref<16xf32, #tpu.memory_space<smem>>
    %c2_66 = arith.constant 2 : index
    %98 = memref.load %arg16[%c2_66] : memref<16xf32, #tpu.memory_space<smem>>
    %c3_67 = arith.constant 3 : index
    %99 = memref.load %arg16[%c3_67] : memref<16xf32, #tpu.memory_space<smem>>
    %c4_68 = arith.constant 4 : index
    %100 = memref.load %arg16[%c4_68] : memref<16xf32, #tpu.memory_space<smem>>
    %c5_69 = arith.constant 5 : index
    %101 = memref.load %arg16[%c5_69] : memref<16xf32, #tpu.memory_space<smem>>
    %c6_70 = arith.constant 6 : index
    %102 = memref.load %arg16[%c6_70] : memref<16xf32, #tpu.memory_space<smem>>
    %c7_71 = arith.constant 7 : index
    %103 = memref.load %arg16[%c7_71] : memref<16xf32, #tpu.memory_space<smem>>
    %c8 = arith.constant 8 : index
    %104 = memref.load %arg16[%c8] : memref<16xf32, #tpu.memory_space<smem>>
    %105 = arith.index_cast %arg0 : i32 to index
    %c0_72 = arith.constant 0 : index
    %106 = memref.load %arg1[%105, %c0_72] : memref<4x8xi32, #tpu.memory_space<smem>>
    %c0_i32_73 = arith.constant 0 : i32
    %c0_i32_74 = arith.constant 0 : i32
    %107 = tpu.memref_slice %arg3[%106, %c0_i32_74] : memref<64x128xf32, #tpu.memory_space<any>> -> memref<1x128xf32, #tpu.memory_space<any>>
    %c0_i32_75 = arith.constant 0 : i32
    %c0_i32_76 = arith.constant 0 : i32
    %108 = tpu.memref_slice %arg23[%c0_i32_75, %c0_i32_76] : memref<8x128xf32, #tpu.memory_space<vmem>> -> memref<1x128xf32, #tpu.memory_space<vmem>>
    %109 = tpu.memref_slice %arg25[%c0_i32_73] : memref<8x!tpu.dma_semaphore, #tpu.memory_space<semaphore_mem>> -> memref<1x!tpu.dma_semaphore, #tpu.memory_space<semaphore_mem>>
    %110 = tpu.memref_squeeze %109 : memref<1x!tpu.dma_semaphore, #tpu.memory_space<semaphore_mem>> -> memref<!tpu.dma_semaphore, #tpu.memory_space<semaphore_mem>>
    tpu.wait_dma2 semaphore(%110 : memref<!tpu.dma_semaphore, #tpu.memory_space<semaphore_mem>>) src(%107 : memref<1x128xf32, #tpu.memory_space<any>>) dst(%108 : memref<1x128xf32, #tpu.memory_space<vmem>>)
    %111 = arith.index_cast %arg0 : i32 to index
    %c1_77 = arith.constant 1 : index
    %112 = memref.load %arg1[%111, %c1_77] : memref<4x8xi32, #tpu.memory_space<smem>>
    %c1_i32_78 = arith.constant 1 : i32
    %c0_i32_79 = arith.constant 0 : i32
    %113 = tpu.memref_slice %arg3[%112, %c0_i32_79] : memref<64x128xf32, #tpu.memory_space<any>> -> memref<1x128xf32, #tpu.memory_space<any>>
    %c1_i32_80 = arith.constant 1 : i32
    %c0_i32_81 = arith.constant 0 : i32
    %114 = tpu.memref_slice %arg23[%c1_i32_80, %c0_i32_81] : memref<8x128xf32, #tpu.memory_space<vmem>> -> memref<1x128xf32, #tpu.memory_space<vmem>>
    %115 = tpu.memref_slice %arg25[%c1_i32_78] : memref<8x!tpu.dma_semaphore, #tpu.memory_space<semaphore_mem>> -> memref<1x!tpu.dma_semaphore, #tpu.memory_space<semaphore_mem>>
    %116 = tpu.memref_squeeze %115 : memref<1x!tpu.dma_semaphore, #tpu.memory_space<semaphore_mem>> -> memref<!tpu.dma_semaphore, #tpu.memory_space<semaphore_mem>>
    tpu.wait_dma2 semaphore(%116 : memref<!tpu.dma_semaphore, #tpu.memory_space<semaphore_mem>>) src(%113 : memref<1x128xf32, #tpu.memory_space<any>>) dst(%114 : memref<1x128xf32, #tpu.memory_space<vmem>>)
    %117 = arith.index_cast %arg0 : i32 to index
    %c2_82 = arith.constant 2 : index
    %118 = memref.load %arg1[%117, %c2_82] : memref<4x8xi32, #tpu.memory_space<smem>>
    %c2_i32_83 = arith.constant 2 : i32
    %c0_i32_84 = arith.constant 0 : i32
    %119 = tpu.memref_slice %arg3[%118, %c0_i32_84] : memref<64x128xf32, #tpu.memory_space<any>> -> memref<1x128xf32, #tpu.memory_space<any>>
    %c2_i32_85 = arith.constant 2 : i32
    %c0_i32_86 = arith.constant 0 : i32
    %120 = tpu.memref_slice %arg23[%c2_i32_85, %c0_i32_86] : memref<8x128xf32, #tpu.memory_space<vmem>> -> memref<1x128xf32, #tpu.memory_space<vmem>>
    %121 = tpu.memref_slice %arg25[%c2_i32_83] : memref<8x!tpu.dma_semaphore, #tpu.memory_space<semaphore_mem>> -> memref<1x!tpu.dma_semaphore, #tpu.memory_space<semaphore_mem>>
    %122 = tpu.memref_squeeze %121 : memref<1x!tpu.dma_semaphore, #tpu.memory_space<semaphore_mem>> -> memref<!tpu.dma_semaphore, #tpu.memory_space<semaphore_mem>>
    tpu.wait_dma2 semaphore(%122 : memref<!tpu.dma_semaphore, #tpu.memory_space<semaphore_mem>>) src(%119 : memref<1x128xf32, #tpu.memory_space<any>>) dst(%120 : memref<1x128xf32, #tpu.memory_space<vmem>>)
    %123 = arith.index_cast %arg0 : i32 to index
    %c3_87 = arith.constant 3 : index
    %124 = memref.load %arg1[%123, %c3_87] : memref<4x8xi32, #tpu.memory_space<smem>>
    %c3_i32_88 = arith.constant 3 : i32
    %c0_i32_89 = arith.constant 0 : i32
    %125 = tpu.memref_slice %arg3[%124, %c0_i32_89] : memref<64x128xf32, #tpu.memory_space<any>> -> memref<1x128xf32, #tpu.memory_space<any>>
    %c3_i32_90 = arith.constant 3 : i32
    %c0_i32_91 = arith.constant 0 : i32
    %126 = tpu.memref_slice %arg23[%c3_i32_90, %c0_i32_91] : memref<8x128xf32, #tpu.memory_space<vmem>> -> memref<1x128xf32, #tpu.memory_space<vmem>>
    %127 = tpu.memref_slice %arg25[%c3_i32_88] : memref<8x!tpu.dma_semaphore, #tpu.memory_space<semaphore_mem>> -> memref<1x!tpu.dma_semaphore, #tpu.memory_space<semaphore_mem>>
    %128 = tpu.memref_squeeze %127 : memref<1x!tpu.dma_semaphore, #tpu.memory_space<semaphore_mem>> -> memref<!tpu.dma_semaphore, #tpu.memory_space<semaphore_mem>>
    tpu.wait_dma2 semaphore(%128 : memref<!tpu.dma_semaphore, #tpu.memory_space<semaphore_mem>>) src(%125 : memref<1x128xf32, #tpu.memory_space<any>>) dst(%126 : memref<1x128xf32, #tpu.memory_space<vmem>>)
    %129 = arith.index_cast %arg0 : i32 to index
    %c4_92 = arith.constant 4 : index
    %130 = memref.load %arg1[%129, %c4_92] : memref<4x8xi32, #tpu.memory_space<smem>>
    %c4_i32_93 = arith.constant 4 : i32
    %c0_i32_94 = arith.constant 0 : i32
    %131 = tpu.memref_slice %arg3[%130, %c0_i32_94] : memref<64x128xf32, #tpu.memory_space<any>> -> memref<1x128xf32, #tpu.memory_space<any>>
    %c4_i32_95 = arith.constant 4 : i32
    %c0_i32_96 = arith.constant 0 : i32
    %132 = tpu.memref_slice %arg23[%c4_i32_95, %c0_i32_96] : memref<8x128xf32, #tpu.memory_space<vmem>> -> memref<1x128xf32, #tpu.memory_space<vmem>>
    %133 = tpu.memref_slice %arg25[%c4_i32_93] : memref<8x!tpu.dma_semaphore, #tpu.memory_space<semaphore_mem>> -> memref<1x!tpu.dma_semaphore, #tpu.memory_space<semaphore_mem>>
    %134 = tpu.memref_squeeze %133 : memref<1x!tpu.dma_semaphore, #tpu.memory_space<semaphore_mem>> -> memref<!tpu.dma_semaphore, #tpu.memory_space<semaphore_mem>>
    tpu.wait_dma2 semaphore(%134 : memref<!tpu.dma_semaphore, #tpu.memory_space<semaphore_mem>>) src(%131 : memref<1x128xf32, #tpu.memory_space<any>>) dst(%132 : memref<1x128xf32, #tpu.memory_space<vmem>>)
    %135 = arith.index_cast %arg0 : i32 to index
    %c5_97 = arith.constant 5 : index
    %136 = memref.load %arg1[%135, %c5_97] : memref<4x8xi32, #tpu.memory_space<smem>>
    %c5_i32_98 = arith.constant 5 : i32
    %c0_i32_99 = arith.constant 0 : i32
    %137 = tpu.memref_slice %arg3[%136, %c0_i32_99] : memref<64x128xf32, #tpu.memory_space<any>> -> memref<1x128xf32, #tpu.memory_space<any>>
    %c5_i32_100 = arith.constant 5 : i32
    %c0_i32_101 = arith.constant 0 : i32
    %138 = tpu.memref_slice %arg23[%c5_i32_100, %c0_i32_101] : memref<8x128xf32, #tpu.memory_space<vmem>> -> memref<1x128xf32, #tpu.memory_space<vmem>>
    %139 = tpu.memref_slice %arg25[%c5_i32_98] : memref<8x!tpu.dma_semaphore, #tpu.memory_space<semaphore_mem>> -> memref<1x!tpu.dma_semaphore, #tpu.memory_space<semaphore_mem>>
    %140 = tpu.memref_squeeze %139 : memref<1x!tpu.dma_semaphore, #tpu.memory_space<semaphore_mem>> -> memref<!tpu.dma_semaphore, #tpu.memory_space<semaphore_mem>>
    tpu.wait_dma2 semaphore(%140 : memref<!tpu.dma_semaphore, #tpu.memory_space<semaphore_mem>>) src(%137 : memref<1x128xf32, #tpu.memory_space<any>>) dst(%138 : memref<1x128xf32, #tpu.memory_space<vmem>>)
    %141 = arith.index_cast %arg0 : i32 to index
    %c6_102 = arith.constant 6 : index
    %142 = memref.load %arg1[%141, %c6_102] : memref<4x8xi32, #tpu.memory_space<smem>>
    %c6_i32_103 = arith.constant 6 : i32
    %c0_i32_104 = arith.constant 0 : i32
    %143 = tpu.memref_slice %arg3[%142, %c0_i32_104] : memref<64x128xf32, #tpu.memory_space<any>> -> memref<1x128xf32, #tpu.memory_space<any>>
    %c6_i32_105 = arith.constant 6 : i32
    %c0_i32_106 = arith.constant 0 : i32
    %144 = tpu.memref_slice %arg23[%c6_i32_105, %c0_i32_106] : memref<8x128xf32, #tpu.memory_space<vmem>> -> memref<1x128xf32, #tpu.memory_space<vmem>>
    %145 = tpu.memref_slice %arg25[%c6_i32_103] : memref<8x!tpu.dma_semaphore, #tpu.memory_space<semaphore_mem>> -> memref<1x!tpu.dma_semaphore, #tpu.memory_space<semaphore_mem>>
    %146 = tpu.memref_squeeze %145 : memref<1x!tpu.dma_semaphore, #tpu.memory_space<semaphore_mem>> -> memref<!tpu.dma_semaphore, #tpu.memory_space<semaphore_mem>>
    tpu.wait_dma2 semaphore(%146 : memref<!tpu.dma_semaphore, #tpu.memory_space<semaphore_mem>>) src(%143 : memref<1x128xf32, #tpu.memory_space<any>>) dst(%144 : memref<1x128xf32, #tpu.memory_space<vmem>>)
    %147 = arith.index_cast %arg0 : i32 to index
    %c7_107 = arith.constant 7 : index
    %148 = memref.load %arg1[%147, %c7_107] : memref<4x8xi32, #tpu.memory_space<smem>>
    %c7_i32_108 = arith.constant 7 : i32
    %c0_i32_109 = arith.constant 0 : i32
    %149 = tpu.memref_slice %arg3[%148, %c0_i32_109] : memref<64x128xf32, #tpu.memory_space<any>> -> memref<1x128xf32, #tpu.memory_space<any>>
    %c7_i32_110 = arith.constant 7 : i32
    %c0_i32_111 = arith.constant 0 : i32
    %150 = tpu.memref_slice %arg23[%c7_i32_110, %c0_i32_111] : memref<8x128xf32, #tpu.memory_space<vmem>> -> memref<1x128xf32, #tpu.memory_space<vmem>>
    %151 = tpu.memref_slice %arg25[%c7_i32_108] : memref<8x!tpu.dma_semaphore, #tpu.memory_space<semaphore_mem>> -> memref<1x!tpu.dma_semaphore, #tpu.memory_space<semaphore_mem>>
    %152 = tpu.memref_squeeze %151 : memref<1x!tpu.dma_semaphore, #tpu.memory_space<semaphore_mem>> -> memref<!tpu.dma_semaphore, #tpu.memory_space<semaphore_mem>>
    tpu.wait_dma2 semaphore(%152 : memref<!tpu.dma_semaphore, #tpu.memory_space<semaphore_mem>>) src(%149 : memref<1x128xf32, #tpu.memory_space<any>>) dst(%150 : memref<1x128xf32, #tpu.memory_space<vmem>>)
    %c0_112 = arith.constant 0 : index
    %c0_113 = arith.constant 0 : index
    %153 = vector.load %arg23[%c0_112, %c0_113] : memref<8x128xf32, #tpu.memory_space<vmem>>, vector<8x128xf32>
    %154 = arith.truncf %153 : vector<8x128xf32> to vector<8x128xbf16>
    %c0_114 = arith.constant 0 : index
    %c0_115 = arith.constant 0 : index
    %155 = vector.load %arg7[%c0_114, %c0_115] : memref<128x128xbf16, #tpu.memory_space<vmem>>, vector<128x128xbf16>
    %cst = arith.constant dense<0.000000e+00> : vector<8x128xf32>
    %156 = tpu.matmul %154, %155, %cst {dimension_numbers = #tpu.dot_dimension_numbers<[1], [0], [0], [1], [0, 0, 1, 1], [], []>} : vector<8x128xbf16>, vector<128x128xbf16>, vector<8x128xf32> -> vector<8x128xf32>
    %c0_116 = arith.constant 0 : index
    %c0_117 = arith.constant 0 : index
    %157 = vector.load %arg8[%c0_116, %c0_117] : memref<1x128xf32, #tpu.memory_space<vmem>>, vector<1x128xf32>
    %158 = vector.broadcast %157 : vector<1x128xf32> to vector<8x128xf32>
    %159 = arith.addf %156, %158 : vector<8x128xf32>
    %c0_118 = arith.constant 0 : index
    %c0_119 = arith.constant 0 : index
    %160 = vector.load %arg9[%c0_118, %c0_119] : memref<128x128xbf16, #tpu.memory_space<vmem>>, vector<128x128xbf16>
    %cst_120 = arith.constant dense<0.000000e+00> : vector<8x128xf32>
    %161 = tpu.matmul %154, %160, %cst_120 {dimension_numbers = #tpu.dot_dimension_numbers<[1], [0], [0], [1], [0, 0, 1, 1], [], []>} : vector<8x128xbf16>, vector<128x128xbf16>, vector<8x128xf32> -> vector<8x128xf32>
    %c0_121 = arith.constant 0 : index
    %c0_122 = arith.constant 0 : index
    %162 = vector.load %arg10[%c0_121, %c0_122] : memref<1x128xf32, #tpu.memory_space<vmem>>, vector<1x128xf32>
    %163 = vector.broadcast %162 : vector<1x128xf32> to vector<8x128xf32>
    %164 = arith.addf %161, %163 : vector<8x128xf32>
    %c0_123 = arith.constant 0 : index
    %c0_124 = arith.constant 0 : index
    %165 = vector.load %arg21[%c0_123, %c0_124] : memref<8x128xf32, #tpu.memory_space<vmem>>, vector<8x128xf32>
    tpu.vector_store %arg21[%c0_123, %c0_124], %159 {strides = array<i32>} : memref<8x128xf32, #tpu.memory_space<vmem>>, vector<8x128xf32>,
    %c0_125 = arith.constant 0 : index
    %c0_126 = arith.constant 0 : index
    %166 = vector.load %arg22[%c0_125, %c0_126] : memref<8x128xf32, #tpu.memory_space<vmem>>, vector<8x128xf32>
    tpu.vector_store %arg22[%c0_125, %c0_126], %164 {strides = array<i32>} : memref<8x128xf32, #tpu.memory_space<vmem>>, vector<8x128xf32>,
    %c0_127 = arith.constant 0 : index
    %c0_128 = arith.constant 0 : index
    %167 = vector.load %arg14[%c0_127, %c0_128] : memref<1x128xf32, #tpu.memory_space<vmem>>, vector<1x128xf32>
    %168 = vector.broadcast %167 : vector<1x128xf32> to vector<8x128xf32>
    %169 = arith.mulf %164, %168 : vector<8x128xf32>
    %cst_129 = arith.constant dense<0.000000e+00> : vector<8xf32>
    %170 = vector.multi_reduction <add>, %169, %cst_129 [1] : vector<8x128xf32> to vector<8xf32>
    %171 = vector.shape_cast %170 : vector<8xf32> to vector<8x1xf32>
    %172 = vector.broadcast %98 : f32 to vector<8x1xf32>
    %173 = arith.addf %171, %172 : vector<8x1xf32>
    %c0_130 = arith.constant 0 : index
    %c0_131 = arith.constant 0 : index
    %174 = vector.load %arg6[%c0_130, %c0_131] : memref<8x1xf32, #tpu.memory_space<vmem>>, vector<8x1xf32>
    %175 = vector.broadcast %99 : f32 to vector<8x1xf32>
    %176 = arith.mulf %175, %174 : vector<8x1xf32>
    %177 = vector.broadcast %100 : f32 to vector<8x1xf32>
    %178 = arith.addf %176, %177 : vector<8x1xf32>
    %179 = vector.broadcast %101 : f32 to vector<8x1xf32>
    %180 = arith.mulf %179, %174 : vector<8x1xf32>
    %181 = vector.broadcast %102 : f32 to vector<8x1xf32>
    %182 = arith.addf %180, %181 : vector<8x1xf32>
    %183 = arith.negf %182 : vector<8x1xf32>
    %184 = math.exp %183 : vector<8x1xf32>
    %cst_132 = arith.constant 1.000000e+00 : f32
    %185 = vector.broadcast %cst_132 : f32 to vector<8x1xf32>
    %186 = arith.addf %185, %184 : vector<8x1xf32>
    %187 = arith.divf %185, %186 : vector<8x1xf32>
    %188 = arith.mulf %187, %173 : vector<8x1xf32>
    %cst_133 = arith.constant 1.000000e+00 : f32
    %189 = vector.broadcast %cst_133 : f32 to vector<8x1xf32>
    %190 = arith.subf %189, %187 : vector<8x1xf32>
    %191 = arith.mulf %190, %178 : vector<8x1xf32>
    %192 = arith.addf %188, %191 : vector<8x1xf32>
    %c0_134 = arith.constant 0 : index
    %c0_135 = arith.constant 0 : index
    %193 = vector.load %arg5[%c0_134, %c0_135] : memref<8x1xf32, #tpu.memory_space<vmem>>, vector<8x1xf32>
    %194 = vector.broadcast %103 : f32 to vector<8x1xf32>
    %195 = arith.mulf %194, %193 : vector<8x1xf32>
    %196 = arith.addf %192, %195 : vector<8x1xf32>
    %c0_136 = arith.constant 0 : index
    %c0_137 = arith.constant 0 : index
    %197 = vector.load %arg19[%c0_136, %c0_137] : memref<8x1xf32, #tpu.memory_space<vmem>>, vector<8x1xf32>
    tpu.vector_store %arg19[%c0_136, %c0_137], %196 {strides = array<i32>} : memref<8x1xf32, #tpu.memory_space<vmem>>, vector<8x1xf32>,
    %198 = arith.index_cast %arg0 : i32 to index
    %c0_138 = arith.constant 0 : index
    %199 = memref.load %arg2[%198, %c0_138] : memref<4x8xi32, #tpu.memory_space<smem>>
    %c0_i32_139 = arith.constant 0 : i32
    %c0_i32_140 = arith.constant 0 : i32
    %200 = tpu.memref_slice %arg3[%199, %c0_i32_140] : memref<64x128xf32, #tpu.memory_space<any>> -> memref<1x128xf32, #tpu.memory_space<any>>
    %c0_i32_141 = arith.constant 0 : i32
    %c0_i32_142 = arith.constant 0 : i32
    %201 = tpu.memref_slice %arg24[%c0_i32_141, %c0_i32_142] : memref<8x128xf32, #tpu.memory_space<vmem>> -> memref<1x128xf32, #tpu.memory_space<vmem>>
    %202 = tpu.memref_slice %arg26[%c0_i32_139] : memref<8x!tpu.dma_semaphore, #tpu.memory_space<semaphore_mem>> -> memref<1x!tpu.dma_semaphore, #tpu.memory_space<semaphore_mem>>
    %203 = tpu.memref_squeeze %202 : memref<1x!tpu.dma_semaphore, #tpu.memory_space<semaphore_mem>> -> memref<!tpu.dma_semaphore, #tpu.memory_space<semaphore_mem>>
    tpu.wait_dma2 semaphore(%203 : memref<!tpu.dma_semaphore, #tpu.memory_space<semaphore_mem>>) src(%200 : memref<1x128xf32, #tpu.memory_space<any>>) dst(%201 : memref<1x128xf32, #tpu.memory_space<vmem>>)
    %204 = arith.index_cast %arg0 : i32 to index
    %c1_143 = arith.constant 1 : index
    %205 = memref.load %arg2[%204, %c1_143] : memref<4x8xi32, #tpu.memory_space<smem>>
    %c1_i32_144 = arith.constant 1 : i32
    %c0_i32_145 = arith.constant 0 : i32
    %206 = tpu.memref_slice %arg3[%205, %c0_i32_145] : memref<64x128xf32, #tpu.memory_space<any>> -> memref<1x128xf32, #tpu.memory_space<any>>
    %c1_i32_146 = arith.constant 1 : i32
    %c0_i32_147 = arith.constant 0 : i32
    %207 = tpu.memref_slice %arg24[%c1_i32_146, %c0_i32_147] : memref<8x128xf32, #tpu.memory_space<vmem>> -> memref<1x128xf32, #tpu.memory_space<vmem>>
    %208 = tpu.memref_slice %arg26[%c1_i32_144] : memref<8x!tpu.dma_semaphore, #tpu.memory_space<semaphore_mem>> -> memref<1x!tpu.dma_semaphore, #tpu.memory_space<semaphore_mem>>
    %209 = tpu.memref_squeeze %208 : memref<1x!tpu.dma_semaphore, #tpu.memory_space<semaphore_mem>> -> memref<!tpu.dma_semaphore, #tpu.memory_space<semaphore_mem>>
    tpu.wait_dma2 semaphore(%209 : memref<!tpu.dma_semaphore, #tpu.memory_space<semaphore_mem>>) src(%206 : memref<1x128xf32, #tpu.memory_space<any>>) dst(%207 : memref<1x128xf32, #tpu.memory_space<vmem>>)
    %210 = arith.index_cast %arg0 : i32 to index
    %c2_148 = arith.constant 2 : index
    %211 = memref.load %arg2[%210, %c2_148] : memref<4x8xi32, #tpu.memory_space<smem>>
    %c2_i32_149 = arith.constant 2 : i32
    %c0_i32_150 = arith.constant 0 : i32
    %212 = tpu.memref_slice %arg3[%211, %c0_i32_150] : memref<64x128xf32, #tpu.memory_space<any>> -> memref<1x128xf32, #tpu.memory_space<any>>
    %c2_i32_151 = arith.constant 2 : i32
    %c0_i32_152 = arith.constant 0 : i32
    %213 = tpu.memref_slice %arg24[%c2_i32_151, %c0_i32_152] : memref<8x128xf32, #tpu.memory_space<vmem>> -> memref<1x128xf32, #tpu.memory_space<vmem>>
    %214 = tpu.memref_slice %arg26[%c2_i32_149] : memref<8x!tpu.dma_semaphore, #tpu.memory_space<semaphore_mem>> -> memref<1x!tpu.dma_semaphore, #tpu.memory_space<semaphore_mem>>
    %215 = tpu.memref_squeeze %214 : memref<1x!tpu.dma_semaphore, #tpu.memory_space<semaphore_mem>> -> memref<!tpu.dma_semaphore, #tpu.memory_space<semaphore_mem>>
    tpu.wait_dma2 semaphore(%215 : memref<!tpu.dma_semaphore, #tpu.memory_space<semaphore_mem>>) src(%212 : memref<1x128xf32, #tpu.memory_space<any>>) dst(%213 : memref<1x128xf32, #tpu.memory_space<vmem>>)
    %216 = arith.index_cast %arg0 : i32 to index
    %c3_153 = arith.constant 3 : index
    %217 = memref.load %arg2[%216, %c3_153] : memref<4x8xi32, #tpu.memory_space<smem>>
    %c3_i32_154 = arith.constant 3 : i32
    %c0_i32_155 = arith.constant 0 : i32
    %218 = tpu.memref_slice %arg3[%217, %c0_i32_155] : memref<64x128xf32, #tpu.memory_space<any>> -> memref<1x128xf32, #tpu.memory_space<any>>
    %c3_i32_156 = arith.constant 3 : i32
    %c0_i32_157 = arith.constant 0 : i32
    %219 = tpu.memref_slice %arg24[%c3_i32_156, %c0_i32_157] : memref<8x128xf32, #tpu.memory_space<vmem>> -> memref<1x128xf32, #tpu.memory_space<vmem>>
    %220 = tpu.memref_slice %arg26[%c3_i32_154] : memref<8x!tpu.dma_semaphore, #tpu.memory_space<semaphore_mem>> -> memref<1x!tpu.dma_semaphore, #tpu.memory_space<semaphore_mem>>
    %221 = tpu.memref_squeeze %220 : memref<1x!tpu.dma_semaphore, #tpu.memory_space<semaphore_mem>> -> memref<!tpu.dma_semaphore, #tpu.memory_space<semaphore_mem>>
    tpu.wait_dma2 semaphore(%221 : memref<!tpu.dma_semaphore, #tpu.memory_space<semaphore_mem>>) src(%218 : memref<1x128xf32, #tpu.memory_space<any>>) dst(%219 : memref<1x128xf32, #tpu.memory_space<vmem>>)
    %222 = arith.index_cast %arg0 : i32 to index
    %c4_158 = arith.constant 4 : index
    %223 = memref.load %arg2[%222, %c4_158] : memref<4x8xi32, #tpu.memory_space<smem>>
    %c4_i32_159 = arith.constant 4 : i32
    %c0_i32_160 = arith.constant 0 : i32
    %224 = tpu.memref_slice %arg3[%223, %c0_i32_160] : memref<64x128xf32, #tpu.memory_space<any>> -> memref<1x128xf32, #tpu.memory_space<any>>
    %c4_i32_161 = arith.constant 4 : i32
    %c0_i32_162 = arith.constant 0 : i32
    %225 = tpu.memref_slice %arg24[%c4_i32_161, %c0_i32_162] : memref<8x128xf32, #tpu.memory_space<vmem>> -> memref<1x128xf32, #tpu.memory_space<vmem>>
    %226 = tpu.memref_slice %arg26[%c4_i32_159] : memref<8x!tpu.dma_semaphore, #tpu.memory_space<semaphore_mem>> -> memref<1x!tpu.dma_semaphore, #tpu.memory_space<semaphore_mem>>
    %227 = tpu.memref_squeeze %226 : memref<1x!tpu.dma_semaphore, #tpu.memory_space<semaphore_mem>> -> memref<!tpu.dma_semaphore, #tpu.memory_space<semaphore_mem>>
    tpu.wait_dma2 semaphore(%227 : memref<!tpu.dma_semaphore, #tpu.memory_space<semaphore_mem>>) src(%224 : memref<1x128xf32, #tpu.memory_space<any>>) dst(%225 : memref<1x128xf32, #tpu.memory_space<vmem>>)
    %228 = arith.index_cast %arg0 : i32 to index
    %c5_163 = arith.constant 5 : index
    %229 = memref.load %arg2[%228, %c5_163] : memref<4x8xi32, #tpu.memory_space<smem>>
    %c5_i32_164 = arith.constant 5 : i32
    %c0_i32_165 = arith.constant 0 : i32
    %230 = tpu.memref_slice %arg3[%229, %c0_i32_165] : memref<64x128xf32, #tpu.memory_space<any>> -> memref<1x128xf32, #tpu.memory_space<any>>
    %c5_i32_166 = arith.constant 5 : i32
    %c0_i32_167 = arith.constant 0 : i32
    %231 = tpu.memref_slice %arg24[%c5_i32_166, %c0_i32_167] : memref<8x128xf32, #tpu.memory_space<vmem>> -> memref<1x128xf32, #tpu.memory_space<vmem>>
    %232 = tpu.memref_slice %arg26[%c5_i32_164] : memref<8x!tpu.dma_semaphore, #tpu.memory_space<semaphore_mem>> -> memref<1x!tpu.dma_semaphore, #tpu.memory_space<semaphore_mem>>
    %233 = tpu.memref_squeeze %232 : memref<1x!tpu.dma_semaphore, #tpu.memory_space<semaphore_mem>> -> memref<!tpu.dma_semaphore, #tpu.memory_space<semaphore_mem>>
    tpu.wait_dma2 semaphore(%233 : memref<!tpu.dma_semaphore, #tpu.memory_space<semaphore_mem>>) src(%230 : memref<1x128xf32, #tpu.memory_space<any>>) dst(%231 : memref<1x128xf32, #tpu.memory_space<vmem>>)
    %234 = arith.index_cast %arg0 : i32 to index
    %c6_168 = arith.constant 6 : index
    %235 = memref.load %arg2[%234, %c6_168] : memref<4x8xi32, #tpu.memory_space<smem>>
    %c6_i32_169 = arith.constant 6 : i32
    %c0_i32_170 = arith.constant 0 : i32
    %236 = tpu.memref_slice %arg3[%235, %c0_i32_170] : memref<64x128xf32, #tpu.memory_space<any>> -> memref<1x128xf32, #tpu.memory_space<any>>
    %c6_i32_171 = arith.constant 6 : i32
    %c0_i32_172 = arith.constant 0 : i32
    %237 = tpu.memref_slice %arg24[%c6_i32_171, %c0_i32_172] : memref<8x128xf32, #tpu.memory_space<vmem>> -> memref<1x128xf32, #tpu.memory_space<vmem>>
    %238 = tpu.memref_slice %arg26[%c6_i32_169] : memref<8x!tpu.dma_semaphore, #tpu.memory_space<semaphore_mem>> -> memref<1x!tpu.dma_semaphore, #tpu.memory_space<semaphore_mem>>
    %239 = tpu.memref_squeeze %238 : memref<1x!tpu.dma_semaphore, #tpu.memory_space<semaphore_mem>> -> memref<!tpu.dma_semaphore, #tpu.memory_space<semaphore_mem>>
    tpu.wait_dma2 semaphore(%239 : memref<!tpu.dma_semaphore, #tpu.memory_space<semaphore_mem>>) src(%236 : memref<1x128xf32, #tpu.memory_space<any>>) dst(%237 : memref<1x128xf32, #tpu.memory_space<vmem>>)
    %240 = arith.index_cast %arg0 : i32 to index
    %c7_173 = arith.constant 7 : index
    %241 = memref.load %arg2[%240, %c7_173] : memref<4x8xi32, #tpu.memory_space<smem>>
    %c7_i32_174 = arith.constant 7 : i32
    %c0_i32_175 = arith.constant 0 : i32
    %242 = tpu.memref_slice %arg3[%241, %c0_i32_175] : memref<64x128xf32, #tpu.memory_space<any>> -> memref<1x128xf32, #tpu.memory_space<any>>
    %c7_i32_176 = arith.constant 7 : i32
    %c0_i32_177 = arith.constant 0 : i32
    %243 = tpu.memref_slice %arg24[%c7_i32_176, %c0_i32_177] : memref<8x128xf32, #tpu.memory_space<vmem>> -> memref<1x128xf32, #tpu.memory_space<vmem>>
    %244 = tpu.memref_slice %arg26[%c7_i32_174] : memref<8x!tpu.dma_semaphore, #tpu.memory_space<semaphore_mem>> -> memref<1x!tpu.dma_semaphore, #tpu.memory_space<semaphore_mem>>
    %245 = tpu.memref_squeeze %244 : memref<1x!tpu.dma_semaphore, #tpu.memory_space<semaphore_mem>> -> memref<!tpu.dma_semaphore, #tpu.memory_space<semaphore_mem>>
    tpu.wait_dma2 semaphore(%245 : memref<!tpu.dma_semaphore, #tpu.memory_space<semaphore_mem>>) src(%242 : memref<1x128xf32, #tpu.memory_space<any>>) dst(%243 : memref<1x128xf32, #tpu.memory_space<vmem>>)
    %c0_178 = arith.constant 0 : index
    %c0_179 = arith.constant 0 : index
    %246 = vector.load %arg24[%c0_178, %c0_179] : memref<8x128xf32, #tpu.memory_space<vmem>>, vector<8x128xf32>
    %247 = arith.truncf %246 : vector<8x128xf32> to vector<8x128xbf16>
    %c0_180 = arith.constant 0 : index
    %c0_181 = arith.constant 0 : index
    %248 = vector.load %arg7[%c0_180, %c0_181] : memref<128x128xbf16, #tpu.memory_space<vmem>>, vector<128x128xbf16>
    %cst_182 = arith.constant dense<0.000000e+00> : vector<8x128xf32>
    %249 = tpu.matmul %247, %248, %cst_182 {dimension_numbers = #tpu.dot_dimension_numbers<[1], [0], [0], [1], [0, 0, 1, 1], [], []>} : vector<8x128xbf16>, vector<128x128xbf16>, vector<8x128xf32> -> vector<8x128xf32>
    %c0_183 = arith.constant 0 : index
    %c0_184 = arith.constant 0 : index
    %250 = vector.load %arg8[%c0_183, %c0_184] : memref<1x128xf32, #tpu.memory_space<vmem>>, vector<1x128xf32>
    %251 = vector.broadcast %250 : vector<1x128xf32> to vector<8x128xf32>
    %252 = arith.addf %249, %251 : vector<8x128xf32>
    %253 = arith.truncf %252 : vector<8x128xf32> to vector<8x128xbf16>
    %c0_185 = arith.constant 0 : index
    %c0_186 = arith.constant 0 : index
    %254 = vector.load %arg11[%c0_185, %c0_186] : memref<128x128xbf16, #tpu.memory_space<vmem>>, vector<128x128xbf16>
    %cst_187 = arith.constant dense<0.000000e+00> : vector<8x128xf32>
    %255 = tpu.matmul %253, %254, %cst_187 {dimension_numbers = #tpu.dot_dimension_numbers<[1], [0], [0], [1], [0, 0, 1, 1], [], []>} : vector<8x128xbf16>, vector<128x128xbf16>, vector<8x128xf32> -> vector<8x128xf32>
    %c0_188 = arith.constant 0 : index
    %c0_189 = arith.constant 0 : index
    %256 = vector.load %arg12[%c0_188, %c0_189] : memref<1x128xf32, #tpu.memory_space<vmem>>, vector<1x128xf32>
    %257 = vector.broadcast %256 : vector<1x128xf32> to vector<8x128xf32>
    %258 = arith.addf %255, %257 : vector<8x128xf32>
    %259 = math.tanh %258 : vector<8x128xf32>
    %c0_190 = arith.constant 0 : index
    %c0_191 = arith.constant 0 : index
    %260 = vector.load %arg13[%c0_190, %c0_191] : memref<1x128xf32, #tpu.memory_space<vmem>>, vector<1x128xf32>
    %261 = vector.broadcast %260 : vector<1x128xf32> to vector<8x128xf32>
    %262 = arith.mulf %259, %261 : vector<8x128xf32>
    %cst_192 = arith.constant dense<0.000000e+00> : vector<8xf32>
    %263 = vector.multi_reduction <add>, %262, %cst_192 [1] : vector<8x128xf32> to vector<8xf32>
    %264 = vector.shape_cast %263 : vector<8xf32> to vector<8x1xf32>
    %c0_193 = arith.constant 0 : index
    %c0_194 = arith.constant 0 : index
    %265 = vector.load %arg4[%c0_193, %c0_194] : memref<8x1xf32, #tpu.memory_space<vmem>>, vector<8x1xf32>
    %266 = vector.broadcast %96 : f32 to vector<8x1xf32>
    %267 = arith.mulf %266, %265 : vector<8x1xf32>
    %268 = arith.addf %264, %267 : vector<8x1xf32>
    %269 = vector.broadcast %97 : f32 to vector<8x1xf32>
    %270 = arith.addf %268, %269 : vector<8x1xf32>
    %cst_195 = arith.constant dense<0xFF800000> : vector<1xf32>
    %271 = vector.multi_reduction <maximumf>, %270, %cst_195 [0] : vector<8x1xf32> to vector<1xf32>
    %272 = vector.shape_cast %271 : vector<1xf32> to vector<1x1xf32>
    %273 = vector.broadcast %272 : vector<1x1xf32> to vector<8x1xf32>
    %274 = arith.subf %270, %273 : vector<8x1xf32>
    %275 = math.exp %274 : vector<8x1xf32>
    %cst_196 = arith.constant dense<0.000000e+00> : vector<1xf32>
    %276 = vector.multi_reduction <add>, %275, %cst_196 [0] : vector<8x1xf32> to vector<1xf32>
    %277 = vector.shape_cast %276 : vector<1xf32> to vector<1x1xf32>
    %278 = tpu.reciprocal %277 {approx = true} : vector<1x1xf32> -> vector<1x1xf32>
    %279 = vector.broadcast %278 : vector<1x1xf32> to vector<8x1xf32>
    %280 = arith.mulf %275, %279 : vector<8x1xf32>
    %281 = vector.broadcast %280 : vector<8x1xf32> to vector<8x128xf32>
    %282 = arith.mulf %281, %252 : vector<8x128xf32>
    %cst_197 = arith.constant dense<0.000000e+00> : vector<128xf32>
    %283 = vector.multi_reduction <add>, %282, %cst_197 [0] : vector<8x128xf32> to vector<128xf32>
    %284 = vector.shape_cast %283 : vector<128xf32> to vector<1x128xf32>
    %285 = vector.shape_cast %284 : vector<1x128xf32> to vector<1x1x128xf32>
    %c0_198 = arith.constant 0 : index
    %c0_199 = arith.constant 0 : index
    %c0_200 = arith.constant 0 : index
    %286 = vector.load %arg20[%c0_198, %c0_199, %c0_200] : memref<1x1x128xf32, #tpu.memory_space<vmem>>, vector<1x1x128xf32>
    tpu.vector_store %arg20[%c0_198, %c0_199, %c0_200], %285 {strides = array<i32>} : memref<1x1x128xf32, #tpu.memory_space<vmem>>, vector<1x1x128xf32>,
    %287 = vector.broadcast %284 : vector<1x128xf32> to vector<8x128xf32>
    %288 = arith.mulf %159, %287 : vector<8x128xf32>
    %cst_201 = arith.constant dense<0.000000e+00> : vector<8xf32>
    %289 = vector.multi_reduction <add>, %288, %cst_201 [1] : vector<8x128xf32> to vector<8xf32>
    %290 = vector.shape_cast %289 : vector<8xf32> to vector<8x1xf32>
    %c0_202 = arith.constant 0 : index
    %c0_203 = arith.constant 0 : index
    %291 = vector.load %arg18[%c0_202, %c0_203] : memref<8x1xf32, #tpu.memory_space<vmem>>, vector<8x1xf32>
    tpu.vector_store %arg18[%c0_202, %c0_203], %290 {strides = array<i32>} : memref<8x1xf32, #tpu.memory_space<vmem>>, vector<8x1xf32>,
    %c0_204 = arith.constant 0 : index
    %c0_205 = arith.constant 0 : index
    %292 = vector.load %arg15[%c0_204, %c0_205] : memref<1x128xf32, #tpu.memory_space<vmem>>, vector<1x128xf32>
    %293 = arith.mulf %284, %292 : vector<1x128xf32>
    %cst_206 = arith.constant dense<0.000000e+00> : vector<1xf32>
    %294 = vector.multi_reduction <add>, %293, %cst_206 [1] : vector<1x128xf32> to vector<1xf32>
    %295 = vector.shape_cast %294 : vector<1xf32> to vector<1x1xf32>
    %296 = vector.broadcast %104 : f32 to vector<1x1xf32>
    %297 = arith.addf %295, %296 : vector<1x1xf32>
    %298 = arith.negf %297 : vector<1x1xf32>
    %299 = math.exp %298 : vector<1x1xf32>
    %cst_207 = arith.constant 1.000000e+00 : f32
    %300 = vector.broadcast %cst_207 : f32 to vector<1x1xf32>
    %301 = arith.addf %300, %299 : vector<1x1xf32>
    %302 = arith.divf %300, %301 : vector<1x1xf32>
    %303 = vector.broadcast %302 : vector<1x1xf32> to vector<8x1xf32>
    %304 = arith.mulf %303, %290 : vector<8x1xf32>
    %cst_208 = arith.constant 1.000000e+00 : f32
    %305 = vector.broadcast %cst_208 : f32 to vector<1x1xf32>
    %306 = arith.subf %305, %302 : vector<1x1xf32>
    %307 = vector.broadcast %306 : vector<1x1xf32> to vector<8x1xf32>
    %308 = arith.mulf %307, %196 : vector<8x1xf32>
    %309 = arith.addf %304, %308 : vector<8x1xf32>
    %c0_209 = arith.constant 0 : index
    %c0_210 = arith.constant 0 : index
    %310 = vector.load %arg17[%c0_209, %c0_210] : memref<8x1xf32, #tpu.memory_space<vmem>>, vector<8x1xf32>
    tpu.vector_store %arg17[%c0_209, %c0_210], %309 {strides = array<i32>} : memref<8x1xf32, #tpu.memory_space<vmem>>, vector<8x1xf32>,
    return
  }
  func.func @transform_1(%arg0: i32, %arg1: memref<4x8xi32, #tpu.memory_space<smem>>, %arg2: memref<4x8xi32, #tpu.memory_space<smem>>) -> (i32, i32) {
    %c0_i32 = arith.constant 0 : i32
    %c0_i32_0 = arith.constant 0 : i32
    return %arg0, %c0_i32 : i32, i32
  }
  func.func @transform_2(%arg0: i32, %arg1: memref<4x8xi32, #tpu.memory_space<smem>>, %arg2: memref<4x8xi32, #tpu.memory_space<smem>>) -> (i32, i32) {
    %c0_i32 = arith.constant 0 : i32
    %c0_i32_0 = arith.constant 0 : i32
    return %arg0, %c0_i32 : i32, i32
  }
  func.func @transform_3(%arg0: i32, %arg1: memref<4x8xi32, #tpu.memory_space<smem>>, %arg2: memref<4x8xi32, #tpu.memory_space<smem>>) -> (i32, i32) {
    %c0_i32 = arith.constant 0 : i32
    %c0_i32_0 = arith.constant 0 : i32
    return %arg0, %c0_i32 : i32, i32
  }
  func.func @transform_4(%arg0: i32, %arg1: memref<4x8xi32, #tpu.memory_space<smem>>, %arg2: memref<4x8xi32, #tpu.memory_space<smem>>) -> (i32, i32) {
    %c0_i32 = arith.constant 0 : i32
    %c0_i32_0 = arith.constant 0 : i32
    %c0_i32_1 = arith.constant 0 : i32
    return %c0_i32, %c0_i32_0 : i32, i32
  }
  func.func @transform_5(%arg0: i32, %arg1: memref<4x8xi32, #tpu.memory_space<smem>>, %arg2: memref<4x8xi32, #tpu.memory_space<smem>>) -> (i32, i32) {
    %c0_i32 = arith.constant 0 : i32
    %c0_i32_0 = arith.constant 0 : i32
    %c0_i32_1 = arith.constant 0 : i32
    return %c0_i32, %c0_i32_0 : i32, i32
  }
  func.func @transform_6(%arg0: i32, %arg1: memref<4x8xi32, #tpu.memory_space<smem>>, %arg2: memref<4x8xi32, #tpu.memory_space<smem>>) -> (i32, i32) {
    %c0_i32 = arith.constant 0 : i32
    %c0_i32_0 = arith.constant 0 : i32
    %c0_i32_1 = arith.constant 0 : i32
    return %c0_i32, %c0_i32_0 : i32, i32
  }
  func.func @transform_7(%arg0: i32, %arg1: memref<4x8xi32, #tpu.memory_space<smem>>, %arg2: memref<4x8xi32, #tpu.memory_space<smem>>) -> (i32, i32) {
    %c0_i32 = arith.constant 0 : i32
    %c0_i32_0 = arith.constant 0 : i32
    %c0_i32_1 = arith.constant 0 : i32
    return %c0_i32, %c0_i32_0 : i32, i32
  }
  func.func @transform_8(%arg0: i32, %arg1: memref<4x8xi32, #tpu.memory_space<smem>>, %arg2: memref<4x8xi32, #tpu.memory_space<smem>>) -> (i32, i32) {
    %c0_i32 = arith.constant 0 : i32
    %c0_i32_0 = arith.constant 0 : i32
    %c0_i32_1 = arith.constant 0 : i32
    return %c0_i32, %c0_i32_0 : i32, i32
  }
  func.func @transform_9(%arg0: i32, %arg1: memref<4x8xi32, #tpu.memory_space<smem>>, %arg2: memref<4x8xi32, #tpu.memory_space<smem>>) -> (i32, i32) {
    %c0_i32 = arith.constant 0 : i32
    %c0_i32_0 = arith.constant 0 : i32
    %c0_i32_1 = arith.constant 0 : i32
    return %c0_i32, %c0_i32_0 : i32, i32
  }
  func.func @transform_10(%arg0: i32, %arg1: memref<4x8xi32, #tpu.memory_space<smem>>, %arg2: memref<4x8xi32, #tpu.memory_space<smem>>) -> (i32, i32) {
    %c0_i32 = arith.constant 0 : i32
    %c0_i32_0 = arith.constant 0 : i32
    %c0_i32_1 = arith.constant 0 : i32
    return %c0_i32, %c0_i32_0 : i32, i32
  }
  func.func @transform_11(%arg0: i32, %arg1: memref<4x8xi32, #tpu.memory_space<smem>>, %arg2: memref<4x8xi32, #tpu.memory_space<smem>>) -> (i32, i32) {
    %c0_i32 = arith.constant 0 : i32
    %c0_i32_0 = arith.constant 0 : i32
    %c0_i32_1 = arith.constant 0 : i32
    return %c0_i32, %c0_i32_0 : i32, i32
  }
  func.func @transform_12(%arg0: i32, %arg1: memref<4x8xi32, #tpu.memory_space<smem>>, %arg2: memref<4x8xi32, #tpu.memory_space<smem>>) -> (i32, i32) {
    %c0_i32 = arith.constant 0 : i32
    %c0_i32_0 = arith.constant 0 : i32
    %c0_i32_1 = arith.constant 0 : i32
    return %c0_i32, %c0_i32_0 : i32, i32
  }
  func.func @transform_13(%arg0: i32, %arg1: memref<4x8xi32, #tpu.memory_space<smem>>, %arg2: memref<4x8xi32, #tpu.memory_space<smem>>) -> i32 {
    %c0_i32 = arith.constant 0 : i32
    %c0_i32_0 = arith.constant 0 : i32
    return %c0_i32 : i32
  }
  func.func @transform_14(%arg0: i32, %arg1: memref<4x8xi32, #tpu.memory_space<smem>>, %arg2: memref<4x8xi32, #tpu.memory_space<smem>>) -> (i32, i32) {
    %c0_i32 = arith.constant 0 : i32
    %c0_i32_0 = arith.constant 0 : i32
    return %arg0, %c0_i32 : i32, i32
  }
  func.func @transform_15(%arg0: i32, %arg1: memref<4x8xi32, #tpu.memory_space<smem>>, %arg2: memref<4x8xi32, #tpu.memory_space<smem>>) -> (i32, i32) {
    %c0_i32 = arith.constant 0 : i32
    %c0_i32_0 = arith.constant 0 : i32
    return %arg0, %c0_i32 : i32, i32
  }
  func.func @transform_16(%arg0: i32, %arg1: memref<4x8xi32, #tpu.memory_space<smem>>, %arg2: memref<4x8xi32, #tpu.memory_space<smem>>) -> (i32, i32) {
    %c0_i32 = arith.constant 0 : i32
    %c0_i32_0 = arith.constant 0 : i32
    return %arg0, %c0_i32 : i32, i32
  }
  func.func @transform_17(%arg0: i32, %arg1: memref<4x8xi32, #tpu.memory_space<smem>>, %arg2: memref<4x8xi32, #tpu.memory_space<smem>>) -> (i32, i32, i32) {
    %c0_i32 = arith.constant 0 : i32
    %c0_i32_0 = arith.constant 0 : i32
    %c0_i32_1 = arith.constant 0 : i32
    return %arg0, %c0_i32, %c0_i32_0 : i32, i32, i32
  }
  func.func @transform_18(%arg0: i32, %arg1: memref<4x8xi32, #tpu.memory_space<smem>>, %arg2: memref<4x8xi32, #tpu.memory_space<smem>>) -> (i32, i32) {
    %c0_i32 = arith.constant 0 : i32
    %c0_i32_0 = arith.constant 0 : i32
    return %arg0, %c0_i32 : i32, i32
  }
  func.func @transform_19(%arg0: i32, %arg1: memref<4x8xi32, #tpu.memory_space<smem>>, %arg2: memref<4x8xi32, #tpu.memory_space<smem>>) -> (i32, i32) {
    %c0_i32 = arith.constant 0 : i32
    %c0_i32_0 = arith.constant 0 : i32
    return %arg0, %c0_i32 : i32, i32
  }
}

</mosaic_0001>

<bundles_post_ra>
// kernel: tpu_custom_call.1
= control target key start
LH: loop header
LB: loop body
LE: loop exit
PB: predicated region body
PF: predicated region fallthrough
CT: control target
= control target key end

     0   :  { %s3990_s0 = inlined_call_operand.vmem [shape: s32[4,8], index: 0, kind: input, shape index: {}]   ;;  %s3991_s2 = inlined_call_operand.vmem [shape: f32[64,128], index: 2, kind: input, shape index: {}]   ;;  %s3992_s3 = inlined_call_operand.vmem [shape: f32[32,1], index: 3, kind: input, shape index: {}]   ;;  %s3993_s4 = inlined_call_operand.vmem [shape: f32[32,1], index: 4, kind: input, shape index: {}]   ;;  %s3994_s5 = inlined_call_operand.vmem [shape: f32[32,1], index: 5, kind: input, shape index: {}]   ;;  %s3995_s6 = inlined_call_operand.hbm [shape: bf16[128,128], index: 6, kind: input, shape index: {}]   ;;  %s3996_s7 = inlined_call_operand.vmem [shape: f32[1,128], index: 7, kind: input, shape index: {}]   ;;  %s3997_s8 = inlined_call_operand.hbm [shape: bf16[128,128], index: 8, kind: input, shape index: {}]   ;;  %s3998_s9 = inlined_call_operand.vmem [shape: f32[1,128], index: 9, kind: input, shape index: {}]   ;;  %s3999_s10 = inlined_call_operand.hbm [shape: bf16[128,128], index: 10, kind: input, shape index: {}]   ;;  %s4000_s11 = inlined_call_operand.vmem [shape: f32[1,128], index: 11, kind: input, shape index: {}]   ;;  %s4001_s12 = inlined_call_operand.vmem [shape: f32[1,128], index: 12, kind: input, shape index: {}]   ;;  %s4002_s13 = inlined_call_operand.vmem [shape: f32[1,128], index: 13, kind: input, shape index: {}]   ;;  %s4003_s14 = inlined_call_operand.vmem [shape: f32[1,128], index: 14, kind: input, shape index: {}]   ;;  %s4004_s15 = inlined_call_operand.vmem [shape: f32[16], index: 15, kind: input, shape index: {}]   ;;  %s4005_s16 = inlined_call_operand.vmem [shape: f32[32,1], index: 16, kind: output, shape index: {0}]   ;;  %s4006_s17 = inlined_call_operand.vmem [shape: f32[32,1], index: 17, kind: output, shape index: {1}]   ;;  %s4007_s18 = inlined_call_operand.vmem [shape: f32[32,1], index: 18, kind: output, shape index: {2}]   ;;  %s4008_s19 = inlined_call_operand.hbm [shape: f32[4,1,128], index: 19, kind: output, shape index: {3}]   ;;  %s4009_s20 = inlined_call_operand.hbm [shape: f32[32,128], index: 20, kind: output, shape index: {4}]   ;;  %s4010_s21 = inlined_call_operand.hbm [shape: f32[32,128], index: 21, kind: output, shape index: {5}]   ;;  %s4011_s1 = inlined_call_operand.vmem [shape: s32[4,8], index: 1, kind: input, shape index: {}]  }
   0x1   :  { %4038 = sst [smem:[#allocation68_spill]] %s3990_s0  ;;  %s31_s28 = sshll.u32 %s4011_s1, 4  ;;  %s32_s28 = int_to_ptr.vmem [resolvable:$true] %s31_s28 }
   0x2   :  { %4039 = sst [smem:[#allocation69_spill]] %s3991_s2 }
   0x3   :  { %4040 = sst [smem:[#allocation70_spill]] %s3992_s3 }
   0x4   :  { %4041 = sst [smem:[#allocation71_spill]] %s3993_s4 }
   0x5   :  { %4042 = sst [smem:[#allocation72_spill]] %s3994_s5 }
   0x6   :  { %4043 = sst [smem:[#allocation73_spill]] %s3995_s6 }
   0x7   :  { %4044 = sst [smem:[#allocation74_spill]] %s3996_s7 }
   0x8   :  { %4045 = sst [smem:[#allocation75_spill]] %s3997_s8 }
   0x9   :  { %4046 = sst [smem:[#allocation76_spill]] %s3999_s10 }
   0xa   :  { %4047 = sst [smem:[#allocation77_spill]] %s4000_s11 }
   0xb   :  { %4048 = sst [smem:[#allocation78_spill]] %s4001_s12 }
   0xc   :  { %4049 = sst [smem:[#allocation79_spill]] %s4003_s14 }
   0xd   :  { %4050 = sst [smem:[#allocation80_spill]] %s4004_s15 }
   0xe   :  { %4051 = sst [smem:[#allocation81_spill]] %s4008_s19 }
   0xf   :  { %4052 = sst [smem:[#allocation82_spill]] %s4009_s20 }
  0x10   :  { %4053 = sst [smem:[#allocation83_spill]] %s4010_s21 }
  0x11   :  { %s4054_s26 = sld [smem:[#allocation68_spill]] }
  0x17   :  { %s27_s14 = sshll.u32 %s4054_s26, 4  ;;  %s28_s14 = int_to_ptr.vmem [resolvable:$true] %s27_s14 }
  0x18   :  { %s3131_s29 = scalar_lea.vmem %s28_s14, 64  ;;  %p3136_p1 = scmp.lt.s32.totalorder %s28_s14, %s28_s14 }
  0x19   :  { %p3132_p0 = scmp.ne.s32.totalorder %s28_s14, %s3131_s29  ;;  %p3137_p2 = scmp.lt.s32.totalorder %s3131_s29, %s3131_s29 }
  0x1b   :  { %p3138_p3 = por %p3137_p2, %p3136_p1 }
  0x1d   :  { %p3139_p4 = pnand %p3138_p3, %p3132_p0 }
  0x1f   :  { %3142 = shalt.err (!%p3139_p4)  }
  0x20   :  { %s3412_s0 = smov [#allocation7]   ;;  %s3143_s5 = scalar_lea.vmem %s32_s28, 64 }
  0x21   :  { %30 = dma.vmem_to_smem %s28_s14, 64, %s3412_s0, [#allocation6] }
  0x22   :  { %p3144_p5 = scmp.ne.s32.totalorder %s32_s28, %s3143_s5  ;;  %p3148_p6 = scmp.lt.s32.totalorder %s32_s28, %s32_s28 }
  0x23   :  { %p3149_p7 = scmp.lt.s32.totalorder %s3143_s5, %s3143_s5 }
  0x25   :  { %p3150_p8 = por %p3149_p7, %p3148_p6 }
  0x27   :  { %p3151_p9 = pnand %p3150_p8, %p3144_p5 }
  0x29   :  { %3154 = shalt.err (!%p3151_p9)  }
  0x2a   :  { %s3413_s30 = smov [#allocation8]  }
  0x2b   :  { %34 = dma.vmem_to_smem %s32_s28, 64, %s3413_s30, [#allocation6] }
  0x2c   :  { %3342 = dma.done.wait [#allocation6], 128 }
  0x2d   :  { %3343 = vsyncadd [#allocation6], 4294967168 }
  0x2e   :  { %36 = sfence }
  0x2f   :  { %37 = vsyncpa [#allocation10], 0 }
  0x30   :  { %38 = vsyncpa [#allocation14], 0 }
  0x31   :  { %39 = vsyncpa [#allocation12], 0 }
  0x32   :  { %40 = vsyncpa [#allocation11], 0 }
  0x33   :  { %42 = vsyncpa [#allocation11 + $0x1], 0 }
  0x34   :  { %43 = vsyncpa [#allocation19], 0 }
  0x35   :  { %45 = vsyncpa [#allocation19 + $0x1], 0  ;;  %s3542_s1 = smov 0   ;;  %s3544_s14 = smov 0  }
  0x36   :  { %s3546_s6 = smov 0   ;;  %s3548_s22 = smov 0  }
  0x37 LB: > { %4055 = sst [smem:[#allocation59_spill]] %s3398_s1  ;;  %s3563_s23 = sadd.s32 4294967295, %s3410_s22   ;;  %s3410_s22 = sphi %s3548_s22, %s4108_s22   ;;  %s3406_s6 = sphi %s3546_s6, %s4111_s6   ;;  %s3402_s14 = sphi %s3544_s14, %s4110_s14   ;;  %s3398_s1 = sphi %s3542_s1, %s4109_s1  }
  0x38   : > { %4056 = sst [smem:[#allocation60_spill]] %s3402_s14  ;;  %s4016_s2 = sadd.s32 4294967294, %s3410_s22  }
  0x39   : > { %4057 = sst [smem:[#allocation61_spill]] %s3406_s6  ;;  %s3567_s24 = sadd.s32 1, %s3410_s22  }
  0x3a   : > { %4058 = sst [smem:[#allocation62_spill]] %s3410_s22  ;;  %s424_s3 = sadd.s32 1, %s3406_s6 }
  0x3b   : > { %4059 = sst [smem:[#allocation63_spill]] %s3563_s23  ;;  %s421_s25 = ssub.s32 %s3410_s22, %s3567_s24 }
  0x3c   : > { %4060 = sst [smem:[#allocation64_spill]] %s3567_s24  ;;  %p434_p10 = scmp.ne.s32.totalorder %s3406_s6, %s3402_s14 }
  0x3d   : > { %p422_p11 = scmp.eq.s32.totalorder %s421_s25, 0  ;;  %p435_p12 = scmp.eq.s32.totalorder %s3563_s23, 3 }
  0x3e   : > { %p440_p13 = scmp.ne.s32.totalorder %s3402_s14, %s3398_s1  ;;  %p441_p0 = scmp.eq.s32.totalorder %s4016_s2, 3 }
  0x3f   : > { %s3580_s26 = scalar_select %p422_p11, %s3406_s6, %s424_s3  }
  0x40   : > { %p3582_p1 = por %p435_p12, %p434_p10  ;;  %p3586_p2 = por %p441_p0, %p440_p13 }
  0x41   : > { %4061 = sst [smem:[#allocation65_spill]] %s3580_s26  ;;  %p2780_p3 = scmp.ge.s32.totalorder %s3410_s22, 1 }
  0x42   : > { %s4062_s27 = scalar_select %p3582_p1, 1, 0 }
  0x43   : > { %s4064_s4 = scalar_select %p3586_p2, 1, 0 }
  0x44   : > { %4063 = sst [smem:[#allocation66_spill]] %s4062_s27  ;;  %p500_p4 = scmp.lt.s32.totalorder %s3410_s22, 5 }
  0x45   : > { %4065 = sst [smem:[#allocation67_spill]] %s4064_s4  ;;  %p4020_p5 = scmp.eq.s32.totalorder %s3563_s23, 0 }
  0x46   : > { %p3593_p6 = pnand %p2780_p3, %p500_p4  ;;  %s3414_s29 = smov [#allocation13]  }
  0x47   : > { %s528_s0 = sshll.u32 %s3414_s29, 4  ;;  %s3415_s30 = smov [#allocation9]   ;;  %s529_s0 = int_to_ptr.vmem [resolvable:$true] %s528_s0 }
  0x48   : > { %p3009_p7 = pneg %p3593_p6  ;;  %s512_s3 = sshll.u32 %s3415_s30, 4  ;;  %s513_s3 = int_to_ptr.vmem [resolvable:$true] %s512_s3 }
  0x49   : > { %s3416_s25 = smov [#allocation15]   ;;  %s3166_s26 = scalar_lea.vmem %s529_s0, 1024 }
  0x4a   : > { %p3601_p8 = pnand %p4020_p5, %p3009_p7  ;;  %s544_s2 = sshll.u32 %s3416_s25, 4  ;;  %s545_s2 = int_to_ptr.vmem [resolvable:$true] %s544_s2 }
  0x4b   : > { %p3167_p10 = scmp.ne.s32.totalorder %s529_s0, %s3166_s26  ;;  %p3174_p13 = scmp.lt.s32.totalorder %s529_s0, %s529_s0 }
  0x4c   : > { %p3157_p9 = pneg %p3601_p8  ;;  %p3175_p0 = scmp.lt.s32.totalorder %s3166_s26, %s3166_s26 }
  0x4e   : > { %p3169_p11 = pnand %p3167_p10, %p3157_p9  ;;  %p3176_p3 = por %p3175_p0, %p3174_p13 }
  0x50   : > { %p3170_p12 = pneg %p3169_p11 }
  0x52   : > { %p3177_p4 = pnand %p3176_p3, %p3170_p12 }
  0x54   : > { %3180 = shalt.err (!%p3177_p4)
}
  0x55   : > { %s3417_s29 = smov 64   ;;  %s3418_s30 = smov 4  }
  0x56   : > { %s4068_s8 = sld [smem:[#allocation75_spill]]  ;;  %s3192_s24 = scalar_lea.vmem %s513_s3, 1024 }
  0x57   : > { %p3193_p7 = scmp.ne.s32.totalorder %s513_s3, %s3192_s24  ;;  %p3200_p5 = scmp.lt.s32.totalorder %s513_s3, %s513_s3 }
  0x58   : > { %p3201_p2 = scmp.lt.s32.totalorder %s3192_s24, %s3192_s24 }
  0x59   : > { %p3195_p10 = pnand %p3193_p7, %p3157_p9 }
  0x5a   : > { %p3202_p13 = por %p3201_p2, %p3200_p5 }
  0x5b   : > { %p3196_p11 = pneg %p3195_p10 }
  0x5c   : > { %3015 = dma.hbm_to_vmem [thread:$0]  (!%p3601_p8), %s4068_s8, 1024, %s529_s0, [#allocation14], %s3417_s29, %s3417_s29, %s3418_s30  }
  0x5d   : > { %p3203_p12 = pnand %p3202_p13, %p3196_p11 }
  0x5f   : > { %3206 = shalt.err (!%p3203_p12)
}
  0x60   : > { %s4069_s1 = sld [smem:[#allocation73_spill]]  ;;  %s3218_s8 = scalar_lea.vmem %s545_s2, 1024 }
  0x61   : > { %s4070_s15 = sld [smem:[#allocation80_spill]]  ;;  %p3219_p0 = scmp.ne.s32.totalorder %s545_s2, %s3218_s8 }
  0x62   : > { %p3226_p5 = scmp.lt.s32.totalorder %s545_s2, %s545_s2  ;;  %p3227_p4 = scmp.lt.s32.totalorder %s3218_s8, %s3218_s8 }
  0x63   : > { %p3221_p3 = pnand %p3219_p0, %p3157_p9 }
  0x64   : > { %p3228_p7 = por %p3227_p4, %p3226_p5 }
  0x65   : > { %p3222_p2 = pneg %p3221_p3 }
  0x66   : > { %3012 = dma.hbm_to_vmem [thread:$0]  (!%p3601_p8), %s4069_s1, 1024, %s513_s3, [#allocation10], %s3417_s29, %s3417_s29, %s3418_s30  }
  0x67   : > { %s570_s25 = sshll.u32 %s4070_s15, 4  ;;  %p3229_p10 = pnand %p3228_p7, %p3222_p2  ;;  %s571_s25 = int_to_ptr.vmem [resolvable:$true] %s570_s25 }
  0x69   : > { %3232 = shalt.err (!%p3229_p10)
}
  0x6a   : > { %s4071_s10 = sld [smem:[#allocation76_spill]]  ;;  %s3233_s4 = scalar_lea.vmem %s571_s25, 16 }
  0x6b   : > { %p3234_p11 = scmp.ne.s32.totalorder %s571_s25, %s3233_s4  ;;  %p3241_p0 = scmp.lt.s32.totalorder %s571_s25, %s571_s25 }
  0x6c   : > { %p3242_p3 = scmp.lt.s32.totalorder %s3233_s4, %s3233_s4 }
  0x6d   : > { %p3236_p13 = pnand %p3234_p11, %p3157_p9 }
  0x6e   : > { %p3243_p1 = por %p3242_p3, %p3241_p0 }
  0x6f   : > { %p3237_p12 = pneg %p3236_p13 }
  0x70   : > { %3018 = dma.hbm_to_vmem [thread:$0]  (!%p3601_p8), %s4071_s10, 1024, %s545_s2, [#allocation14], %s3417_s29, %s3417_s29, %s3418_s30  }
  0x71   : > { %p3244_p5 = pnand %p3243_p1, %p3237_p12 }
  0x73   : > { %3247 = shalt.err (!%p3244_p5)
}
  0x74   : > { %s3419_s8 = smov [#allocation16]   ;;  %604 = sbr.rel (%p3593_p6) target bundleno = 1672 (0x688), region = 72 }
  0x75   : > { %3021 = dma.vmem_to_smem (!%p3601_p8), %s571_s25, 16, %s3419_s8, [#allocation12]  }
  0x76   : > { %p4072_p2 = scmp.eq.s32.totalorder (!%p3593_p6), %s3563_s23, 0 }
  0x79   : > { %3345 = dma.done.wait (%p4072_p2), [#allocation10], 1024   ;;  %p4073_p4 = pmov %p4072_p2 }
  0x7a   : > { %p4074_p9 = pmov %p4072_p2 }
  0x7b   : > { %3347 = vsyncadd (%p4073_p4), [#allocation10], 4294966272 }
  0x7c   : > { %3349 = dma.done.wait (%p4074_p9), [#allocation14], 2048   ;;  %p4075_p7 = pmov %p4072_p2 }
  0x7d   : > { %p4076_p1 = pmov %p4072_p2 }
  0x7e   : > { %3351 = vsyncadd (%p4075_p7), [#allocation14], 4294965248 }
  0x7f   : > { %3353 = dma.done.wait (%p4076_p1), [#allocation12], 16   ;;  %p4077_p8 = pmov %p4076_p1 }
  0x81   : > { %3355 = vsyncadd (%p4077_p8), [#allocation12], 4294967280 }
  0x82   : > { %622 = sfence }
  0x83   : > { %s3654_s2 = sand.u32 1, %s3402_s14   ;;  %p699_p6 = scmp.lt.s32.totalorder %s3563_s23, 3 }
  0x84   : > { %s2791_s28 = sshll.u32 %s3654_s2, 3  ;;  %s3660_s3 = sshll.u32 %s3563_s23, 7 }
  0x85   : > { %s700_s5 = scalar_select %p699_p6, %s3563_s23, 3 }
  0x86   : > { %s725_s30 = sld [smem:[#allocation7 + %s3660_s3]]  ;;  %s3693_s15 = scalar_lea.vmem [#allocation18], %s2791_s28 }
  0x87   : > { %s3662_s29 = sshll.u32 %s700_s5, 3  ;;  %s4078_s0 = sld [smem:[#allocation70_spill]] }
  0x88   : > { %s4079_s4 = sld [smem:[#allocation71_spill]] }
  0x89   : > { %s4080_s14 = sld [smem:[#allocation72_spill]] }
  0x8a   : > { %s4082_s24 = sld [smem:[#allocation69_spill]] }
  0x8f   : > { %s4081_s21 = smov %s4080_s14  ;;  %s3695_s14 = scalar_lea.vmem [#allocation20], %s2791_s28 }
  0x90   : > { %s726_s1 = scalar_lea.vmem %s4082_s24, %s725_s30 }
  0x91   : > { %v745_v0 = vld [vmem:[%s726_s1] sm:$0x1] }
  0x92   : > { %746 = vst [vmem:[#allocation2] sm:$0x1] %v745_v0 }
  0x93   : > { %772 = vsyncadd [#allocation4], 16  ;;  %s773_s19 = sadd.s32 1, %s3660_s3 }
  0x94   : > { %s774_s22 = sld [smem:[#allocation7 + %s773_s19]] }
  0x9a   : > { %s775_s11 = scalar_lea.vmem %s4082_s24, %s774_s22 }
  0x9b   : > { %v796_v1 = vld [vmem:[%s775_s11] sm:$0x1] }
  0x9c   : > { %797 = vst [vmem:[#allocation2 + $0x1] sm:$0x1] %v796_v1 }
  0x9d   : > { %823 = vsyncadd [#allocation4 + $0x1], 16  ;;  %s824_s27 = sadd.s32 2, %s3660_s3 }
  0x9e   : > { %s825_s30 = sld [smem:[#allocation7 + %s824_s27]] }
  0xa4   : > { %s826_s6 = scalar_lea.vmem %s4082_s24, %s825_s30 }
  0xa5   : > { %v847_v2 = vld [vmem:[%s826_s6] sm:$0x1] }
  0xa6   : > { %848 = vst [vmem:[#allocation2 + $0x2] sm:$0x1] %v847_v2 }
  0xa7   : > { %874 = vsyncadd [#allocation4 + $0x2], 16  ;;  %s875_s1 = sadd.s32 3, %s3660_s3 }
  0xa8   : > { %s876_s22 = sld [smem:[#allocation7 + %s875_s1]] }
  0xae   : > { %s877_s11 = scalar_lea.vmem %s4082_s24, %s876_s22 }
  0xaf   : > { %v898_v3 = vld [vmem:[%s877_s11] sm:$0x1] }
  0xb0   : > { %899 = vst [vmem:[#allocation2 + $0x3] sm:$0x1] %v898_v3 }
  0xb1   : > { %925 = vsyncadd [#allocation4 + $0x3], 16  ;;  %s926_s20 = sadd.s32 4, %s3660_s3 }
  0xb2   : > { %s927_s30 = sld [smem:[#allocation7 + %s926_s20]] }
  0xb8   : > { %s928_s6 = scalar_lea.vmem %s4082_s24, %s927_s30 }
  0xb9   : > { %v949_v4 = vld [vmem:[%s928_s6] sm:$0x1] }
  0xba   : > { %950 = vst [vmem:[#allocation2 + $0x4] sm:$0x1] %v949_v4 }
  0xbb   : > { %976 = vsyncadd [#allocation4 + $0x4], 16  ;;  %s977_s12 = sadd.s32 5, %s3660_s3 }
  0xbc   : > { %s978_s22 = sld [smem:[#allocation7 + %s977_s12]] }
  0xc2   : > { %s979_s11 = scalar_lea.vmem %s4082_s24, %s978_s22 }
  0xc3   : > { %v1000_v5 = vld [vmem:[%s979_s11] sm:$0x1] }
  0xc4   : > { %1001 = vst [vmem:[#allocation2 + $0x5] sm:$0x1] %v1000_v5 }
  0xc5   : > { %1027 = vsyncadd [#allocation4 + $0x5], 16  ;;  %s1028_s10 = sadd.s32 6, %s3660_s3 }
  0xc6   : > { %s1029_s30 = sld [smem:[#allocation7 + %s1028_s10]] }
  0xcc   : > { %s1030_s6 = scalar_lea.vmem %s4082_s24, %s1029_s30 }
  0xcd   : > { %v1051_v6 = vld [vmem:[%s1030_s6] sm:$0x1] }
  0xce   : > { %1052 = vst [vmem:[#allocation2 + $0x6] sm:$0x1] %v1051_v6 }
  0xcf   : > { %1078 = vsyncadd [#allocation4 + $0x6], 16  ;;  %s4035_s26 = sadd.s32 7, %s3660_s3 }
  0xd0   : > { %s1080_s22 = sld [smem:[#allocation7 + %s4035_s26]] }
  0xd6   : > { %s1081_s11 = scalar_lea.vmem %s4082_s24, %s1080_s22 }
  0xd7   : > { %v1102_v7 = vld [vmem:[%s1081_s11] sm:$0x1] }
  0xd8   : > { %1103 = vst [vmem:[#allocation2 + $0x7] sm:$0x1] %v1102_v7 }
  0xd9   : > { %1129 = vsyncadd [#allocation4 + $0x7], 16  ;;  %s1130_s8 = sld [smem:[#allocation8 + %s3660_s3]] }
  0xdf   : > { %s1131_s30 = scalar_lea.vmem %s4082_s24, %s1130_s8 }
  0xe0   : > { %v1150_v8 = vld [vmem:[%s1131_s30] sm:$0x1] }
  0xe1   : > { %1151 = vst [vmem:[#allocation3] sm:$0x1] %v1150_v8 }
  0xe2   : > { %1177 = vsyncadd [#allocation5], 16  ;;  %s1178_s25 = sld [smem:[#allocation8 + %s773_s19]] }
  0xe8   : > { %s1179_s23 = scalar_lea.vmem %s4082_s24, %s1178_s25 }
  0xe9   : > { %v1200_v9 = vld [vmem:[%s1179_s23] sm:$0x1] }
  0xea   : > { %1201 = vst [vmem:[#allocation3 + $0x1] sm:$0x1] %v1200_v9 }
  0xeb   : > { %1227 = vsyncadd [#allocation5 + $0x1], 16  ;;  %s1228_s22 = sld [smem:[#allocation8 + %s824_s27]] }
  0xf1   : > { %s1229_s8 = scalar_lea.vmem %s4082_s24, %s1228_s22 }
  0xf2   : > { %v1250_v10 = vld [vmem:[%s1229_s8] sm:$0x1] }
  0xf3   : > { %1251 = vst [vmem:[#allocation3 + $0x2] sm:$0x1] %v1250_v10 }
  0xf4   : > { %1277 = vsyncadd [#allocation5 + $0x2], 16  ;;  %s1278_s5 = sld [smem:[#allocation8 + %s875_s1]] }
  0xfa   : > { %s1279_s26 = scalar_lea.vmem %s4082_s24, %s1278_s5 }
  0xfb   : > { %v1300_v11 = vld [vmem:[%s1279_s26] sm:$0x1] }
  0xfc   : > { %1301 = vst [vmem:[#allocation3 + $0x3] sm:$0x1] %v1300_v11 }
  0xfd   : > { %1327 = vsyncadd [#allocation5 + $0x3], 16  ;;  %s1328_s27 = sld [smem:[#allocation8 + %s926_s20]] }
 0x103   : > { %s1329_s6 = scalar_lea.vmem %s4082_s24, %s1328_s27 }
 0x104   : > { %v1350_v12 = vld [vmem:[%s1329_s6] sm:$0x1] }
 0x105   : > { %1351 = vst [vmem:[#allocation3 + $0x4] sm:$0x1] %v1350_v12 }
 0x106   : > { %1377 = vsyncadd [#allocation5 + $0x4], 16  ;;  %s1378_s1 = sld [smem:[#allocation8 + %s977_s12]] }
 0x10c   : > { %s1379_s7 = scalar_lea.vmem %s4082_s24, %s1378_s1 }
 0x10d   : > { %v1400_v13 = vld [vmem:[%s1379_s7] sm:$0x1] }
 0x10e   : > { %1401 = vst [vmem:[#allocation3 + $0x5] sm:$0x1] %v1400_v13 }
 0x10f   : > { %1427 = vsyncadd [#allocation5 + $0x5], 16  ;;  %s1428_s20 = sld [smem:[#allocation8 + %s1028_s10]] }
 0x115   : > { %s1429_s5 = scalar_lea.vmem %s4082_s24, %s1428_s20 }
 0x116   : > { %v1450_v14 = vld [vmem:[%s1429_s5] sm:$0x1] }
 0x117   : > { %1451 = vst [vmem:[#allocation3 + $0x6] sm:$0x1] %v1450_v14 }
 0x118   : > { %1477 = vsyncadd [#allocation5 + $0x6], 16  ;;  %s4083_s19 = sadd.s32 7, %s3660_s3 }
 0x119   : > { %s1478_s12 = sld [smem:[#allocation8 + %s4083_s19]] }
 0x11f   : > { %s1479_s27 = scalar_lea.vmem %s4082_s24, %s1478_s12 }
 0x120   : > { %v1500_v15 = vld [vmem:[%s1479_s27] sm:$0x1] }
 0x121   : > { %1501 = vst [vmem:[#allocation3 + $0x7] sm:$0x1] %v1500_v15 }
 0x122   : > { %1527 = vsyncadd [#allocation5 + $0x7], 16  ;;  %s3778_s30 = sld [smem:[#allocation16]] }
 0x123   : > { %s3780_s10 = sld [smem:[#allocation16 + $0x1]] }
 0x124   : > { %s3782_s25 = sld [smem:[#allocation16 + $0x2]] }
 0x125   : > { %s3784_s6 = sld [smem:[#allocation16 + $0x3]] }
 0x126   : > { %s3786_s1 = sld [smem:[#allocation16 + $0x4]] }
 0x127   : > { %s3788_s23 = sld [smem:[#allocation16 + $0x5]] }
 0x128   : > { %s3790_s22 = sld [smem:[#allocation16 + $0x6]] }
 0x129   : > { %s3792_s7 = sld [smem:[#allocation16 + $0x7]] }
 0x12a   : > { %s3794_s20 = sld [smem:[#allocation16 + $0x8]] }
 0x12b   : > { %3356 = dma.done.wait [#allocation4], 16 }
 0x12c   : > { %3357 = vsyncadd [#allocation4], 4294967280 }
 0x12d   : > { %3358 = dma.done.wait [#allocation4 + $0x1], 16 }
 0x12e   : > { %3359 = vsyncadd [#allocation4 + $0x1], 4294967280 }
 0x12f   : > { %3360 = dma.done.wait [#allocation4 + $0x2], 16 }
 0x130   : > { %3361 = vsyncadd [#allocation4 + $0x2], 4294967280 }
 0x131   : > { %3362 = dma.done.wait [#allocation4 + $0x3], 16 }
 0x132   : > { %3363 = vsyncadd [#allocation4 + $0x3], 4294967280 }
 0x133   : > { %3364 = dma.done.wait [#allocation4 + $0x4], 16 }
 0x134   : > { %3365 = vsyncadd [#allocation4 + $0x4], 4294967280 }
 0x135   : > { %3366 = dma.done.wait [#allocation4 + $0x5], 16 }
 0x136   : > { %3367 = vsyncadd [#allocation4 + $0x5], 4294967280 }
 0x137   : > { %3368 = dma.done.wait [#allocation4 + $0x6], 16 }
 0x138   : > { %3369 = vsyncadd [#allocation4 + $0x6], 4294967280 }
 0x139   : > { %3370 = dma.done.wait [#allocation4 + $0x7], 16 }
 0x13a   : > { %3371 = vsyncadd [#allocation4 + $0x7], 4294967280  ;;  %v3420_v16 = vmov 0.0   ;;  %vm3421_vm0 = vmmov 0   ;;  %v3084_v17 = vld [vmem:[#allocation13 + $0x38] sm:$0xff]   ;;  %v3085_v18 = vld [vmem:[#allocation13 + $0x30] sm:$0xff]   ;;  %s4085_s8 = scalar_lea.vmem %s4081_s21, %s3662_s29  ;;  %v1805_v50 = vstv %s3788_s23  ;;  %v1807_v52 = vstv %s3790_s22  ;;  %s4086_s22 = scalar_lea.vmem %s4079_s4, %s3662_s29 }
 0x13b   : > { %2927 = vmatprep.subr.bf16.mxu1 %v3420_v16  ;;  %2943 = vmatprep.mubr.msk.bf16.mxu1 %vm3421_vm0, %v3420_v16  ;;  %v3086_v19 = vld [vmem:[#allocation13 + $0x28] sm:$0xff]   ;;  %v3092_v20 = vld [vmem:[#allocation9 + $0x38] sm:$0xff]   ;;  %v3087_v21 = vld [vmem:[#allocation13 + $0x20] sm:$0xff]   ;;  %s4084_s26 = sld [smem:[#allocation74_spill]]  ;;  %v1801_v57 = vstv %s3784_s6  ;;  %v1803_v60 = vstv %s3786_s1  ;;  %v1798_v63 = vstv %s3782_s25  ;;  %v1820_v2 = vstv %s3792_s7  ;;  %s4087_s25 = scalar_lea.vmem %s4007_s18, %s3662_s29 }
 0x13c   : > { %2907 = vmatprep.subr.bf16.mxu0 %v3420_v16  ;;  %2923 = vmatprep.mubr.msk.bf16.mxu0 %vm3421_vm0, %v3420_v16  ;;  %v3093_v22 = vld [vmem:[#allocation9 + $0x30] sm:$0xff]   ;;  %v3088_v23 = vld [vmem:[#allocation13 + $0x18] sm:$0xff]   ;;  %v3094_v24 = vld [vmem:[#allocation9 + $0x28] sm:$0xff]   ;;  %vm1823_vm1 = vcmask 7168  }
 0x13d   : > { %2928 = vmatpush3.bf16.msra.mxu1 %v3084_v17  ;;  %2908 = vmatpush3.bf16.msra.mxu0 %v3092_v20  ;;  %v3089_v25 = vld [vmem:[#allocation13 + $0x10] sm:$0xff]   ;;  %v3095_v26 = vld [vmem:[#allocation9 + $0x20] sm:$0xff]   ;;  %v3090_v27 = vld [vmem:[#allocation13 + $0x8] sm:$0xff]  }
 0x13e   : > { %2929 = vmatprep.subr.bf16.mxu1 %v3420_v16  ;;  %2909 = vmatprep.subr.bf16.mxu0 %v3420_v16  ;;  %v3096_v28 = vld [vmem:[#allocation9 + $0x18] sm:$0xff]   ;;  %v3091_v29 = vld [vmem:[#allocation13] sm:$0xff]   ;;  %v1562_v30 = vld [vmem:[#allocation2] sm:$0xff] }
 0x13f   : > { %v3097_v31 = vld [vmem:[#allocation9 + $0x10] sm:$0xff]   ;;  %v1563_v32 = vpack.c.bf16 %v1562_v30, %v1562_v30  ;;  %v3098_v33 = vld [vmem:[#allocation9 + $0x8] sm:$0xff]   ;;  %v3099_v34 = vld [vmem:[#allocation9] sm:$0xff]  }
 0x140   : > { %v2817_v35 = vld [vmem:[%s3998_s9] ss:$0 sm:$0xff] }
 0x141   : > { %2930 = vmatpush3.bf16.msra.mxu1 %v3085_v18  ;;  %2910 = vmatpush3.bf16.msra.mxu0 %v3093_v22  ;;  %v2826_v37 = vld [vmem:[%s4002_s13] ss:$0 sm:$0xff] }
 0x142   : > { %2931 = vmatprep.subr.bf16.mxu1 %v3420_v16  ;;  %2911 = vmatprep.subr.bf16.mxu0 %v3420_v16  ;;  %v2808_v43 = vld [vmem:[%s4084_s26] ss:$0 sm:$0xff] }
 0x143   : > { %v1800_v49 = vld [vmem:[%s4085_s8] sm:$0xff] }
 0x144   : > { %v1806_v51 = vmul.f32 %v1805_v50, %v1800_v49  ;;  %v1802_v58 = vmul.f32 %v1801_v57, %v1800_v49  ;;  %v1819_v1 = vld [vmem:[%s4086_s22] sm:$0xff] }
 0x145   : > { %2932 = vmatpush3.bf16.msra.mxu1 %v3086_v19  ;;  %2912 = vmatpush3.bf16.msra.mxu0 %v3094_v24  ;;  %v1821_v6 = vmul.f32 %v1820_v2, %v1819_v1 }
 0x146   : > { %2933 = vmatprep.subr.bf16.mxu1 %v3420_v16  ;;  %2913 = vmatprep.subr.bf16.mxu0 %v3420_v16  ;;  %v1808_v53 = vadd.f32 %v1807_v52, %v1806_v51  ;;  %v1804_v61 = vadd.f32 %v1803_v60, %v1802_v58 }
 0x148   : > { %v2827_v54 = vmul.f32 -1.442695, %v1808_v53 }
 0x149   : > { %2934 = vmatpush3.bf16.msra.mxu1 %v3087_v21  ;;  %2914 = vmatpush3.bf16.msra.mxu0 %v3095_v26 }
 0x14a   : > { %2935 = vmatprep.subr.bf16.mxu1 %v3420_v16  ;;  %2915 = vmatprep.subr.bf16.mxu0 %v3420_v16  ;;  %3100 = vpow2.f32 %v2827_v54 }
 0x14d   : > { %2936 = vmatpush3.bf16.msra.mxu1 %v3088_v23  ;;  %2916 = vmatpush3.bf16.msra.mxu0 %v3096_v28 }
 0x14e   : > { %2937 = vmatprep.subr.bf16.mxu1 %v3420_v16  ;;  %2917 = vmatprep.subr.bf16.mxu0 %v3420_v16 }
 0x151   : > { %2938 = vmatpush3.bf16.msra.mxu1 %v3089_v25  ;;  %2918 = vmatpush3.bf16.msra.mxu0 %v3097_v31 }
 0x152   : > { %2939 = vmatprep.subr.bf16.mxu1 %v3420_v16  ;;  %2919 = vmatprep.subr.bf16.mxu0 %v3420_v16 }
 0x155   : > { %2940 = vmatpush3.bf16.msra.mxu1 %v3090_v27  ;;  %2920 = vmatpush3.bf16.msra.mxu0 %v3098_v33 }
 0x156   : > { %2941 = vmatprep.subr.bf16.mxu1 %v3420_v16  ;;  %2921 = vmatprep.subr.bf16.mxu0 %v3420_v16 }
 0x157   : > { %v3101_v55 = vpop.eup %3100 }
 0x158   : > { %v1812_v56 = vadd.f32 1.0, %v3101_v55 }
 0x159   : > { %2942 = vmatpush3.bf16.msra.mxu1 %v3091_v29  ;;  %2922 = vmatpush3.bf16.msra.mxu0 %v3099_v34 }
 0x15a   : > { %3102 = vrcp.f32 %v1812_v56 }
 0x15c   : > { %2944 = vmatmul.mubr.bf16.vlgmr.msra.gmra.mxu1 %v1563_v32  ;;  %2924 = vmatmul.mubr.bf16.vlgmr.msra.gmra.mxu0 %v1563_v32 }
 0x167   : > { %v3103_v59 = vpop.eup %3102 }
 0x168   : > { %v1816_v62 = vsub.f32 1.0, %v3103_v59 }
 0x16a   : > { %v1817_v4 = vmul.f32 %v1816_v62, %v1804_v61 }
 0x21c   : > { %v1780_v36 = vpop.f32.mrf.mxu1  ;;  %v1669_v44 = vpop.f32.mrf.mxu0 }
 0x21d   : > { %v1781_v38 = vadd.f32 %v2817_v35, %v1780_v36  ;;  %v3826_v45 = vadd.f32 %v2808_v43, %v1669_v44 }
 0x21e   : > { %v2945_v39 = vpop.f32.mrf.mxu1  ;;  %v2925_v46 = vpop.f32.mrf.mxu0 }
 0x21f   : > { %1787 = vst [vmem:[%s3695_s14] sm:$0xff] %v1781_v38  ;;  %v1795_v40 = vmul.f32 %v2826_v37, %v1781_v38  ;;  %1786 = vst [vmem:[%s3693_s15] sm:$0xff] %v3826_v45 }
 0x220   : > { %v1783_v41 = vpop.f32.mrf.mxu1  ;;  %v1672_v47 = vpop.f32.mrf.mxu0 }
 0x221   : > { %1796 = vadd.xlane.f32.xlu0 %v1795_v40 }
 0x222   : > { %v2946_v42 = vpop.f32.mrf.mxu1  ;;  %v2926_v48 = vpop.f32.mrf.mxu0 }
 0x2aa   : > { %v1797_v0 = vpop.xlane.xlu0 %1796 }
 0x2ab   : > { %v1799_v3 = vadd.f32 %v1798_v63, %v1797_v0 }
 0x2ad   : > { %v1815_v5 = vmul.f32 %v3103_v59, %v1799_v3 }
 0x2af   : > { %v1818_v7 = vadd.f32 %v1817_v4, %v1815_v5 }
 0x2b1   : > { %v3846_v8 = vadd.f32 %v1821_v6, %v1818_v7 }
 0x2b3   : > { %1824 = vst.msk [vmem:[%s4087_s25] sm:$0xff] %vm1823_vm1, %v3846_v8 }
 0x2b4   : > { %3372 = dma.done.wait [#allocation5], 16 }
 0x2b5   : > { %3373 = vsyncadd [#allocation5], 4294967280 }
 0x2b6   : > { %3374 = dma.done.wait [#allocation5 + $0x1], 16 }
 0x2b7   : > { %3375 = vsyncadd [#allocation5 + $0x1], 4294967280 }
 0x2b8   : > { %3376 = dma.done.wait [#allocation5 + $0x2], 16 }
 0x2b9   : > { %3377 = vsyncadd [#allocation5 + $0x2], 4294967280 }
 0x2ba   : > { %3378 = dma.done.wait [#allocation5 + $0x3], 16 }
 0x2bb   : > { %3379 = vsyncadd [#allocation5 + $0x3], 4294967280 }
 0x2bc   : > { %3380 = dma.done.wait [#allocation5 + $0x4], 16 }
 0x2bd   : > { %3381 = vsyncadd [#allocation5 + $0x4], 4294967280 }
 0x2be   : > { %3382 = dma.done.wait [#allocation5 + $0x5], 16 }
 0x2bf   : > { %3383 = vsyncadd [#allocation5 + $0x5], 4294967280 }
 0x2c0   : > { %3384 = dma.done.wait [#allocation5 + $0x6], 16 }
 0x2c1   : > { %3385 = vsyncadd [#allocation5 + $0x6], 4294967280 }
 0x2c2   : > { %3386 = dma.done.wait [#allocation5 + $0x7], 16 }
 0x2c3   : > { %3387 = vsyncadd [#allocation5 + $0x7], 4294967280  ;;  %2947 = vmatprep.subr.bf16.mxu0 %v3420_v16  ;;  %2963 = vmatprep.mubr.msk.bf16.mxu0 %vm3421_vm0, %v3420_v16  ;;  %v3105_v9 = vld [vmem:[#allocation9 + $0x38] sm:$0xff]   ;;  %v3106_v10 = vld [vmem:[#allocation9 + $0x30] sm:$0xff]   ;;  %s4088_s27 = sld [smem:[#allocation77_spill]]  ;;  %v3422_v43 = vmov 0   ;;  %s4090_s6 = scalar_lea.vmem %s4078_s0, %s3662_s29  ;;  %v2086_v46 = vstv %s3778_s30  ;;  %v2089_v48 = vstv %s3780_s10 }
 0x2c4   : > { %2967 = vmatprep.subr.bf16.mxu1 %v3420_v16  ;;  %2983 = vmatprep.mubr.msk.bf16.mxu1 %vm3421_vm0, %v3420_v16  ;;  %v3107_v11 = vld [vmem:[#allocation9 + $0x28] sm:$0xff]   ;;  %v3113_v12 = vld [vmem:[#allocation15 + $0x38] sm:$0xff]   ;;  %v3108_v13 = vld [vmem:[#allocation9 + $0x20] sm:$0xff]   ;;  %s4089_s23 = sld [smem:[#allocation78_spill]]  ;;  %vm2129_vm2 = vcmask 1040384   ;;  %s4094_s19 = scalar_lea.vmem [#allocation17], %s3654_s2 }
 0x2c5   : > { %2948 = vmatpush3.bf16.msra.mxu0 %v3105_v9  ;;  %2968 = vmatpush3.bf16.msra.mxu1 %v3113_v12  ;;  %v3114_v14 = vld [vmem:[#allocation15 + $0x30] sm:$0xff]   ;;  %v3109_v15 = vld [vmem:[#allocation9 + $0x18] sm:$0xff]   ;;  %v3115_v17 = vld [vmem:[#allocation15 + $0x28] sm:$0xff]   ;;  %s4091_s30 = sld [smem:[#allocation63_spill]]  ;;  %s2211_s28 = sshll.u32 %s3693_s15, 4  ;;  %s2212_s28 = int_to_ptr.vmem [resolvable:$true] %s2211_s28 }
 0x2c6   : > { %2949 = vmatprep.subr.bf16.mxu0 %v3420_v16  ;;  %2969 = vmatprep.subr.bf16.mxu1 %v3420_v16  ;;  %v3110_v18 = vld [vmem:[#allocation9 + $0x10] sm:$0xff]   ;;  %v3116_v19 = vld [vmem:[#allocation15 + $0x20] sm:$0xff]   ;;  %v3111_v20 = vld [vmem:[#allocation9 + $0x8] sm:$0xff]   ;;  %s4092_s25 = sld [smem:[#allocation79_spill]]  ;;  %s3248_s22 = scalar_lea.vmem %s2212_s28, 128 }
 0x2c7   : > { %v3117_v21 = vld [vmem:[#allocation15 + $0x18] sm:$0xff]   ;;  %v3112_v22 = vld [vmem:[#allocation9] sm:$0xff]   ;;  %v3118_v24 = vld [vmem:[#allocation15 + $0x10] sm:$0xff]   ;;  %3104 = vset.pattern.permute.xlu0 %v3422_v43  ;;  %s4093_s7 = sld [smem:[#allocation66_spill]]  ;;  %p3249_p10 = scmp.ne.s32.totalorder %s2212_s28, %s3248_s22 }
 0x2c8   : > { %v1849_v23 = vld [vmem:[#allocation3] sm:$0xff]  ;;  %v3119_v26 = vld [vmem:[#allocation15 + $0x8] sm:$0xff]   ;;  %v3120_v27 = vld [vmem:[#allocation15] sm:$0xff]   ;;  %s4095_s8 = sld [smem:[#allocation82_spill]] }
 0x2c9   : > { %2950 = vmatpush3.bf16.msra.mxu0 %v3106_v10  ;;  %2970 = vmatpush3.bf16.msra.mxu1 %v3114_v14  ;;  %v1850_v25 = vpack.c.bf16 %v1849_v23, %v1849_v23  ;;  %v2828_v28 = vld [vmem:[%s4084_s26] ss:$0 sm:$0xff] }
 0x2ca   : > { %2951 = vmatprep.subr.bf16.mxu0 %v3420_v16  ;;  %2971 = vmatprep.subr.bf16.mxu1 %v3420_v16  ;;  %v2837_v35 = vld [vmem:[%s4088_s27] ss:$0 sm:$0xff] }
 0x2cb   : > { %v2846_v40 = vld [vmem:[%s4089_s23] ss:$0 sm:$0xff]  ;;  %s2170_s12 = sand.u32 1, %s4091_s30  }
 0x2cc   : > { %v2085_v44 = vld [vmem:[%s4090_s6] sm:$0xff]  ;;  %s3905_s5 = scalar_lea.sflag [#allocation19], %s2170_s12  ;;  %s3423_s6 = smov [#allocation18]  }
 0x2cd   : > { %2952 = vmatpush3.bf16.msra.mxu0 %v3107_v11  ;;  %2972 = vmatpush3.bf16.msra.mxu1 %v3115_v17  ;;  %v2087_v47 = vmul.f32 %v2086_v46, %v2085_v44  ;;  %p4096_p11 = scmp.ne.s32.totalorder %s4093_s7, 0  ;;  %s3252_s10 = sshll.u32 %s3423_s6, 4  ;;  %s3253_s10 = int_to_ptr.vmem [resolvable:$false] %s3252_s10 }
 0x2ce   : > { %2953 = vmatprep.subr.bf16.mxu0 %v3420_v16  ;;  %2973 = vmatprep.subr.bf16.mxu1 %v3420_v16  ;;  %s2209_s23 = scalar_lea.hbm %s4095_s8, %s3660_s3  ;;  %s3254_s1 = scalar_lea.vmem %s3253_s10, 256 }
 0x2cf   : > { %p3250_p13 = pnand %p3249_p10, %p4096_p11  ;;  %p3255_p0 = scmp.lt.s32.totalorder %s2212_s28, %s3253_s10 }
 0x2d0   : > { %p3256_p3 = scmp.lt.s32.totalorder %s3254_s1, %s3248_s22 }
 0x2d1   : > { %2954 = vmatpush3.bf16.msra.mxu0 %v3108_v13  ;;  %2974 = vmatpush3.bf16.msra.mxu1 %v3116_v19  ;;  %p3251_p12 = pneg %p3250_p13 }
 0x2d2   : > { %2955 = vmatprep.subr.bf16.mxu0 %v3420_v16  ;;  %2975 = vmatprep.subr.bf16.mxu1 %v3420_v16  ;;  %p3257_p5 = por %p3256_p3, %p3255_p0 }
 0x2d4   : > { %p3258_p2 = pnand %p3257_p5, %p3251_p12 }
 0x2d5   : > { %2956 = vmatpush3.bf16.msra.mxu0 %v3109_v15  ;;  %2976 = vmatpush3.bf16.msra.mxu1 %v3117_v21  ;;  %v2127_v15 = vld [vmem:[%s4092_s25] sm:$0x1] }
 0x2d6   : > { %2957 = vmatprep.subr.bf16.mxu0 %v3420_v16  ;;  %2977 = vmatprep.subr.bf16.mxu1 %v3420_v16 }
 0x2d9   : > { %2958 = vmatpush3.bf16.msra.mxu0 %v3110_v18  ;;  %2978 = vmatpush3.bf16.msra.mxu1 %v3118_v24 }
 0x2da   : > { %2959 = vmatprep.subr.bf16.mxu0 %v3420_v16  ;;  %2979 = vmatprep.subr.bf16.mxu1 %v3420_v16 }
 0x2dd   : > { %2960 = vmatpush3.bf16.msra.mxu0 %v3111_v20  ;;  %2980 = vmatpush3.bf16.msra.mxu1 %v3119_v26 }
 0x2de   : > { %2961 = vmatprep.subr.bf16.mxu0 %v3420_v16  ;;  %2981 = vmatprep.subr.bf16.mxu1 %v3420_v16 }
 0x2e1   : > { %2962 = vmatpush3.bf16.msra.mxu0 %v3112_v22  ;;  %2982 = vmatpush3.bf16.msra.mxu1 %v3120_v27 }
 0x2e4   : > { %2964 = vmatmul.mubr.bf16.vlgmr.msra.gmra.mxu0 %v1850_v25 }
 0x3a4   : > { %v1956_v29 = vpop.f32.mrf.mxu0 }
 0x3a5   : > { %v1957_v30 = vadd.f32 %v2828_v28, %v1956_v29 }
 0x3a6   : > { %v2965_v31 = vpop.f32.mrf.mxu0 }
 0x3a7   : > { %v1962_v32 = vpack.c.bf16 %v1957_v30, %v1957_v30 }
 0x3a8   : > { %v1959_v33 = vpop.f32.mrf.mxu0 }
 0x3a9   : > { %2984 = vmatmul.mubr.bf16.vlgmr.msra.gmra.mxu1 %v1962_v32 }
 0x3aa   : > { %v2966_v34 = vpop.f32.mrf.mxu0 }
 0x469   : > { %v2068_v16 = vpop.f32.mrf.mxu1 }
 0x46a   : > { %v2069_v36 = vadd.f32 %v2837_v35, %v2068_v16 }
 0x46b   : > { %v2985_v37 = vpop.f32.mrf.mxu1 }
 0x46c   : > { %3121 = vtanh.f32 %v2069_v36 }
 0x46d   : > { %v2071_v38 = vpop.f32.mrf.mxu1 }
 0x46f   : > { %v2986_v39 = vpop.f32.mrf.mxu1 }
 0x479   : > { %v3122_v41 = vpop.eup %3121 }
 0x47a   : > { %v2082_v42 = vmul.f32 %v3122_v41, %v2846_v40 }
 0x47c   : > { %2083 = vadd.xlane.f32.xlu0 %v2082_v42 }
 0x505   : > { %v2084_v49 = vpop.xlane.xlu0 %2083 }
 0x506   : > { %v2088_v50 = vadd.f32 %v2087_v47, %v2084_v49 }
 0x508   : > { %v2090_v51 = vadd.f32 %v2089_v48, %v2088_v50 }
 0x50a   : > { %v2091_v52 = vsel %vm1823_vm1, %v2090_v51, -inf }
 0x50b   : > { %v2092_v53 = vrot.slane %v2091_v52, 4 }
 0x50d   : > { %v2093_v54 = vmax.f32 %v2091_v52, %v2092_v53 }
 0x50f   : > { %v2094_v55 = vrot.slane %v2093_v54, 2 }
 0x511   : > { %v2095_v56 = vmax.f32 %v2093_v54, %v2094_v55 }
 0x513   : > { %v2096_v57 = vrot.slane %v2095_v56, 1 }
 0x515   : > { %v2097_v58 = vmax.f32 %v2095_v56, %v2096_v57 }
 0x517   : > { %v2098_v59 = vsub.f32 %v2090_v51, %v2097_v58 }
 0x519   : > { %v2099_v60 = vmul.f32 1.442695, %v2098_v59 }
 0x51b   : > { %3123 = vpow2.f32 %v2099_v60 }
 0x528   : > { %v3124_v61 = vpop.eup %3123 }
 0x529   : > { %v2101_v62 = vsel %vm1823_vm1, %v3124_v61, 0.0 }
 0x52a   : > { %v2102_v63 = vrot.slane %v2101_v62, 4 }
 0x52c   : > { %v2103_v0 = vadd.f32 %v2102_v63, %v2101_v62 }
 0x52e   : > { %v2104_v1 = vrot.slane %v2103_v0, 2 }
 0x530   : > { %v2105_v2 = vadd.f32 %v2104_v1, %v2103_v0 }
 0x532   : > { %v2106_v3 = vrot.slane %v2105_v2, 1 }
 0x534   : > { %v2107_v4 = vadd.f32 %v2106_v3, %v2105_v2 }
 0x536   : > { %3125 = vrcp.f32 %v2107_v4 }
 0x543   : > { %v3126_v5 = vpop.eup %3125 }
 0x544   : > { %v2109_v6 = vmul.f32 %v3126_v5, %v3124_v61 }
 0x546   : > { %2112 = vperm.xlu0 %3104, %v2109_v6  }
 0x5c1   : > { %v2113_v7 = vpop.permute.xlu0 %2112 }
 0x5c2   : > { %v2115_v9 = vmul.f32 %v2113_v7, %v1957_v30 }
 0x5c4   : > { %v2116_v10 = vrot.slane %v2115_v9, 4 }
 0x5c6   : > { %v2117_v11 = vadd.f32 %v2116_v10, %v2115_v9 }
 0x5c8   : > { %v2118_v12 = vrot.slane %v2117_v11, 2 }
 0x5ca   : > { %v2119_v13 = vadd.f32 %v2118_v12, %v2117_v11 }
 0x5cc   : > { %v2120_v14 = vrot.slane %v2119_v13, 1 }
 0x5ce   : > { %v2121_v17 = vadd.f32 %v2120_v14, %v2119_v13 }
 0x5d0   : > { %v2128_v18 = vmul.f32 %v2127_v15, %v2121_v17  ;;  %2122 = vst [vmem:[%s4094_s19] sm:$0x1] %v2121_v17  ;;  %v2123_v20 = vmul.f32 %v2121_v17, %v3826_v45 }
 0x5d2   : > { %v2130_v19 = vsel %vm2129_vm2, %v2128_v18, 0.0 }
 0x5d3   : > { %2131 = vadd.xlane.f32.xlu1 %v2130_v19 }
 0x5d7   : > { %2124 = vadd.xlane.f32.xlu1 %v2123_v20 }
 0x5d8   : > { %3261 = shalt.err (!%p3258_p2)
}
 0x5d9   : > { %s3262_s15 = scalar_lea.hbm %s2209_s23, 128  ;;  %s3266_s12 = scalar_lea.hbm %s4095_s8, 512 }
 0x5da   : > { %p3263_p4 = scmp.ne.s32.totalorder %s2209_s23, %s3262_s15  ;;  %p3267_p1 = scmp.lt.s32.totalorder %s2209_s23, %s4095_s8 }
 0x5db   : > { %p3268_p8 = scmp.lt.s32.totalorder %s3266_s12, %s3262_s15 }
 0x5dc   : > { %p3264_p9 = pnand %p3263_p4, %p4096_p11 }
 0x5dd   : > { %p3269_p6 = por %p3268_p8, %p3267_p1 }
 0x5de   : > { %p3265_p7 = pneg %p3264_p9 }
 0x5e0   : > { %p3270_p10 = pnand %p3269_p6, %p3265_p7 }
 0x5e2   : > { %3273 = shalt.err (!%p3270_p10)
}
 0x5e3   : > { %3004 = dma.vmem_to_hbm [thread:$0]  (%p4096_p11), %s2212_s28, 128, %s2209_s23, %s3905_s5  }
 0x5e4   : > { %s2850_s22 = sshll.u32 %s4091_s30, 4  ;;  %s4097_s6 = scalar_lea.vmem [#allocation17], %s3654_s2 }
 0x5e5   : > { %s2198_s10 = sshll.u32 %s4097_s6, 4  ;;  %s4098_s19 = sld [smem:[#allocation81_spill]]  ;;  %s2199_s10 = int_to_ptr.vmem [resolvable:$true] %s2198_s10 }
 0x5e6   : > { %s2167_s15 = scalar_lea.sflag [#allocation11], %s3654_s2  ;;  %s3274_s12 = scalar_lea.vmem %s2199_s10, 16 }
 0x5e7   : > { %p3275_p13 = scmp.ne.s32.totalorder %s2199_s10, %s3274_s12  ;;  %s3424_s11 = smov [#allocation17]  }
 0x5e8   : > { %s3278_s0 = sshll.u32 %s3424_s11, 4  ;;  %s3279_s0 = int_to_ptr.vmem [resolvable:$false] %s3278_s0 }
 0x5e9   : > { %p3276_p12 = pnand %p3275_p13, %p4096_p11  ;;  %s3280_s4 = scalar_lea.vmem %s3279_s0, 32 }
 0x5ea   : > { %p3281_p3 = scmp.lt.s32.totalorder %s2199_s10, %s3279_s0  ;;  %p3282_p5 = scmp.lt.s32.totalorder %s3280_s4, %s3274_s12 }
 0x5eb   : > { %s2196_s27 = scalar_lea.hbm %s4098_s19, %s2850_s22  ;;  %p3277_p0 = pneg %p3276_p12 }
 0x5ec   : > { %p3283_p2 = por %p3282_p5, %p3281_p3 }
 0x5ee   : > { %p3284_p4 = pnand %p3283_p2, %p3277_p0 }
 0x5f0   : > { %3287 = shalt.err (!%p3284_p4)
}
 0x5f1   : > { %s3288_s30 = scalar_lea.hbm %s2196_s27, 16  ;;  %s3292_s23 = scalar_lea.hbm %s4098_s19, 64 }
 0x5f2   : > { %p3289_p9 = scmp.ne.s32.totalorder %s2196_s27, %s3288_s30  ;;  %p3293_p8 = scmp.lt.s32.totalorder %s2196_s27, %s4098_s19 }
 0x5f3   : > { %p3294_p6 = scmp.lt.s32.totalorder %s3292_s23, %s3288_s30 }
 0x5f4   : > { %p3290_p7 = pnand %p3289_p9, %p4096_p11 }
 0x5f5   : > { %p3295_p10 = por %p3294_p6, %p3293_p8 }
 0x5f6   : > { %p3291_p1 = pneg %p3290_p7 }
 0x5f8   : > { %p3296_p13 = pnand %p3295_p10, %p3291_p1 }
 0x5fa   : > { %3299 = shalt.err (!%p3296_p13)
}
 0x5fb   : > { %3003 = dma.vmem_to_hbm [thread:$0]  (%p4096_p11), %s2199_s10, 16, %s2196_s27, %s2167_s15  }
 0x5fc   : > { %s4099_s1 = sld [smem:[#allocation83_spill]]  ;;  %s2224_s11 = sshll.u32 %s3695_s14, 4  ;;  %s2225_s11 = int_to_ptr.vmem [resolvable:$true] %s2224_s11 }
 0x5fd   : > { %s3300_s2 = scalar_lea.vmem %s2225_s11, 128  ;;  %s3425_s30 = smov [#allocation20]  }
 0x5fe   : > { %p3301_p12 = scmp.ne.s32.totalorder %s2225_s11, %s3300_s2  ;;  %s3304_s28 = sshll.u32 %s3425_s30, 4  ;;  %s3305_s28 = int_to_ptr.vmem [resolvable:$false] %s3304_s28 }
 0x5ff   : > { %s3306_s23 = scalar_lea.vmem %s3305_s28, 256  ;;  %p3307_p5 = scmp.lt.s32.totalorder %s2225_s11, %s3305_s28 }
 0x600   : > { %p3302_p0 = pnand %p3301_p12, %p4096_p11  ;;  %p3308_p2 = scmp.lt.s32.totalorder %s3306_s23, %s3300_s2 }
 0x602   : > { %s4100_s25 = smov %s4099_s1  ;;  %s2222_s12 = scalar_lea.hbm %s4099_s1, %s3660_s3 }
 0x603   : > { %p3303_p3 = pneg %p3302_p0  ;;  %p3309_p4 = por %p3308_p2, %p3307_p5 }
 0x605   : > { %p3310_p9 = pnand %p3309_p4, %p3303_p3 }
 0x607   : > { %3313 = shalt.err (!%p3310_p9)
}
 0x608   : > { %s3314_s10 = scalar_lea.hbm %s2222_s12, 128  ;;  %s3318_s27 = scalar_lea.hbm %s4100_s25, 512 }
 0x609   : > { %p3315_p7 = scmp.ne.s32.totalorder %s2222_s12, %s3314_s10  ;;  %p3319_p6 = scmp.lt.s32.totalorder %s2222_s12, %s4100_s25 }
 0x60a   : > { %p3320_p10 = scmp.lt.s32.totalorder %s3318_s27, %s3314_s10 }
 0x60b   : > { %p3316_p1 = pnand %p3315_p7, %p4096_p11 }
 0x60c   : > { %p3321_p13 = por %p3320_p10, %p3319_p6 }
 0x60d   : > { %p3317_p8 = pneg %p3316_p1 }
 0x60f   : > { %p3322_p12 = pnand %p3321_p13, %p3317_p8 }
 0x611   : > { %3325 = shalt.err (!%p3322_p12)
}
 0x612   : > { %3005 = dma.vmem_to_hbm [thread:$0]  (%p4096_p11), %s2225_s11, 128, %s2222_s12, %s3905_s5   ;;  %v2133_v45 = vstv %s3794_s20  ;;  %v2141_v27 = vlaneseq }
 0x613   : > { %s4101_s4 = scalar_lea.vmem %s4006_s17, %s3662_s29  ;;  %s4102_s5 = scalar_lea.vmem %s4005_s16, %s3662_s29 }
 0x614   : > { %v2142_v28 = vshrl.u32 %v2141_v27, 7 }
 0x616   : > { %v2143_v29 = vsub.s32 0, %v2142_v28 }
 0x65c   : > { %v2132_v21 = vpop.xlane.xlu1 %2131 }
 0x65d   : > { %v2134_v22 = vadd.f32 %v2133_v45, %v2132_v21 }
 0x65f   : > { %v2847_v23 = vmul.f32 -1.442695, %v2134_v22 }
 0x660   : > { %v2125_v24 = vpop.xlane.xlu1 %2124 }
 0x661   : > { %3127 = vpow2.f32 %v2847_v23  ;;  %2126 = vst.msk [vmem:[%s4101_s4] sm:$0xff] %vm1823_vm1, %v2125_v24 }
 0x66e   : > { %v3128_v25 = vpop.eup %3127 }
 0x66f   : > { %v2138_v26 = vadd.f32 1.0, %v3128_v25 }
 0x671   : > { %3129 = vrcp.f32 %v2138_v26 }
 0x67e   : > { %v3130_v30 = vpop.eup %3129 }
 0x67f   : > { %v2144_v31 = vrot.slane %v3130_v30, %v2143_v29  ;;  %v2146_v32 = vsub.f32 1.0, %v3130_v30 }
 0x681   : > { %v2150_v33 = vrot.slane %v2146_v32, %v2143_v29  ;;  %v2145_v35 = vmul.f32 %v2144_v31, %v2125_v24 }
 0x683   : > { %v2151_v34 = vmul.f32 %v2150_v33, %v3846_v8 }
 0x685   : > { %v2152_v16 = vadd.f32 %v2151_v34, %v2145_v35 }
 0x687   : > { %2153 = vst.msk [vmem:[%s4102_s5] sm:$0xff] %vm1823_vm1, %v2152_v16 }
 0x688 PF: > { %s4103_s1 = sld [smem:[#allocation62_spill]] }
 0x689   : > { %s4104_s12 = sld [smem:[#allocation59_spill]] }
 0x68a   : > { %s4105_s11 = sld [smem:[#allocation67_spill]] }
 0x68e   : > { %p3040_p11 = scmp.ge.s32.totalorder %s4103_s1, 2 }
 0x68f   : > { %s2257_s2 = sand.u32 1, %s4104_s12  }
 0x690   : > { %p4106_p0 = scmp.ne.s32.totalorder %s4105_s11, 0  ;;  %s2258_s30 = scalar_lea.sflag [#allocation11], %s2257_s2 }
 0x692   : > { %p3023_p3 = pnand %p3040_p11, %p4106_p0 }
 0x694   : > { %p3024_p5 = pneg %p3023_p3 }
 0x696   : > { %3389 = dma.done.wait (%p3024_p5), %s2258_s30, 16  }
 0x697   : > { %3391 = vsyncadd (%p3024_p5), %s2258_s30, 4294967280  ;;  %s4107_s28 = sadd.s32 4294967294, %s4103_s1  }
 0x698   : > { %s2265_s23 = sand.u32 1, %s4107_s28  }
 0x699   : > { %s2266_s10 = scalar_lea.sflag [#allocation19], %s2265_s23 }
 0x69a   : > { %3393 = dma.done.wait (%p3024_p5), %s2266_s10, 256  }
 0x69b   : > { %3395 = vsyncadd (%p3024_p5), %s2266_s10, 4294967040  ;;  %s4108_s22 = sld [smem:[#allocation64_spill]] }
 0x69c   : > { %s4109_s1 = sld [smem:[#allocation60_spill]] }
 0x69d   : > { %s4110_s14 = sld [smem:[#allocation61_spill]] }
 0x69e   : > { %s4111_s6 = sld [smem:[#allocation65_spill]] }
 0x6a1   : > { %p48_p2 = scmp.ge.s32.totalorder %s4108_s22, 6  }
 0x6a3   :  { %50 = sbr.rel (!%p48_p2) target bundleno = 55 (0x37), region = 897 }
 0x6a8   :  { %2280 = vsyncpa [#allocation10], 1 }
 0x6a9   :  { %2282 = vsyncpa [#allocation10 + $0x1], 1 }
 0x6aa   :  { %2283 = vsyncpa [#allocation14], 1 }
 0x6ab   :  { %2284 = vsyncpa [#allocation11], 1 }
 0x6ac   :  { %2286 = vsyncpa [#allocation11 + $0x1], 1 }
 0x6ad   :  { %2287 = vsyncpa [#allocation19], 1 }
 0x6ae   :  { %2289 = vsyncpa [#allocation19 + $0x1], 1 }
 0x6af   :  { %2290 = vsyncpa [#allocation12], 1 }
 0x6b0   :  { %2292 = vsyncpa [#allocation12 + $0x1], 1 }
 0x6b1   :  { %2293 = vsyncmov [#allocation4] }
 0x6b4   :  { %s2294_s29 = vpop.sfrf %2293 }
 0x6b5   :  { %p2855_p4 = scmp.ne.s32.totalorder %s2294_s29, 0 }
 0x6b7   :  { %2298 = shalt.err (%p2855_p4)  }
 0x6b8   :  { %2300 = vsyncmov [#allocation4 + $0x1] }
 0x6bb   :  { %s2301_s3 = vpop.sfrf %2300 }
 0x6bc   :  { %p2856_p9 = scmp.ne.s32.totalorder %s2301_s3, 0 }
 0x6be   :  { %2305 = shalt.err (%p2856_p9)  }
 0x6bf   :  { %2307 = vsyncmov [#allocation4 + $0x2] }
 0x6c2   :  { %s2308_s27 = vpop.sfrf %2307 }
 0x6c3   :  { %p2857_p7 = scmp.ne.s32.totalorder %s2308_s27, 0 }
 0x6c5   :  { %2312 = shalt.err (%p2857_p7)  }
 0x6c6   :  { %2314 = vsyncmov [#allocation4 + $0x3] }
 0x6c9   :  { %s2315_s9 = vpop.sfrf %2314 }
 0x6ca   :  { %p2858_p1 = scmp.ne.s32.totalorder %s2315_s9, 0 }
 0x6cc   :  { %2319 = shalt.err (%p2858_p1)  }
 0x6cd   :  { %2321 = vsyncmov [#allocation4 + $0x4] }
 0x6d0   :  { %s2322_s13 = vpop.sfrf %2321 }
 0x6d1   :  { %p2859_p8 = scmp.ne.s32.totalorder %s2322_s13, 0 }
 0x6d3   :  { %2326 = shalt.err (%p2859_p8)  }
 0x6d4   :  { %2328 = vsyncmov [#allocation4 + $0x5] }
 0x6d7   :  { %s2329_s16 = vpop.sfrf %2328 }
 0x6d8   :  { %p2860_p6 = scmp.ne.s32.totalorder %s2329_s16, 0 }
 0x6da   :  { %2333 = shalt.err (%p2860_p6)  }
 0x6db   :  { %2335 = vsyncmov [#allocation4 + $0x6] }
 0x6de   :  { %s2336_s17 = vpop.sfrf %2335 }
 0x6df   :  { %p2861_p10 = scmp.ne.s32.totalorder %s2336_s17, 0 }
 0x6e1   :  { %2340 = shalt.err (%p2861_p10)  }
 0x6e2   :  { %2342 = vsyncmov [#allocation4 + $0x7] }
 0x6e5   :  { %s2343_s18 = vpop.sfrf %2342 }
 0x6e6   :  { %p2862_p13 = scmp.ne.s32.totalorder %s2343_s18, 0 }
 0x6e8   :  { %2347 = shalt.err (%p2862_p13)  }
 0x6e9   :  { %2348 = vsyncmov [#allocation5] }
 0x6ec   :  { %s2349_s21 = vpop.sfrf %2348 }
 0x6ed   :  { %p2863_p12 = scmp.ne.s32.totalorder %s2349_s21, 0 }
 0x6ef   :  { %2353 = shalt.err (%p2863_p12)  }
 0x6f0   :  { %2355 = vsyncmov [#allocation5 + $0x1] }
 0x6f3   :  { %s2356_s24 = vpop.sfrf %2355 }
 0x6f4   :  { %p2864_p11 = scmp.ne.s32.totalorder %s2356_s24, 0 }
 0x6f6   :  { %2360 = shalt.err (%p2864_p11)  }
 0x6f7   :  { %2362 = vsyncmov [#allocation5 + $0x2] }
 0x6fa   :  { %s2363_s26 = vpop.sfrf %2362 }
 0x6fb   :  { %p2865_p0 = scmp.ne.s32.totalorder %s2363_s26, 0 }
 0x6fd   :  { %2367 = shalt.err (%p2865_p0)  }
 0x6fe   :  { %2369 = vsyncmov [#allocation5 + $0x3] }
 0x701   :  { %s2370_s8 = vpop.sfrf %2369 }
 0x702   :  { %p2866_p3 = scmp.ne.s32.totalorder %s2370_s8, 0 }
 0x704   :  { %2374 = shalt.err (%p2866_p3)  }
 0x705   :  { %2376 = vsyncmov [#allocation5 + $0x4] }
 0x708   :  { %s2377_s19 = vpop.sfrf %2376 }
 0x709   :  { %p2867_p5 = scmp.ne.s32.totalorder %s2377_s19, 0 }
 0x70b   :  { %2381 = shalt.err (%p2867_p5)  }
 0x70c   :  { %2383 = vsyncmov [#allocation5 + $0x5] }
 0x70f   :  { %s2384_s25 = vpop.sfrf %2383 }
 0x710   :  { %p2868_p2 = scmp.ne.s32.totalorder %s2384_s25, 0 }
 0x712   :  { %2388 = shalt.err (%p2868_p2)  }
 0x713   :  { %2390 = vsyncmov [#allocation5 + $0x6] }
 0x716   :  { %s2391_s14 = vpop.sfrf %2390 }
 0x717   :  { %p2869_p4 = scmp.ne.s32.totalorder %s2391_s14, 0 }
 0x719   :  { %2395 = shalt.err (%p2869_p4)  }
 0x71a   :  { %2397 = vsyncmov [#allocation5 + $0x7] }
 0x71d   :  { %s2398_s15 = vpop.sfrf %2397 }
 0x71e   :  { %p2870_p9 = scmp.ne.s32.totalorder %s2398_s15, 0 }
 0x720   :  { %2402 = shalt.err (%p2870_p9)  }

</bundles_post_ra>
